<compile_context>
chip_gen: v7x
topology: tpu7x:2x2x1
jax: 0.10.0
libtpu: 0.0.40
codegen_flags: <defaults>
</compile_context>

<pallas_src>
import functools

import jax
import jax.numpy as jnp
import numpy as np
from jax import lax
from jax.experimental import pallas as pl
from jax.experimental.pallas import tpu as pltpu


# ----------------------------------------------------------------------------
# Fused ExpandingBlock kernel body (one grid step per batch image).
# ----------------------------------------------------------------------------
def _expanding_block_kernel(
    x_ref,       # (1, C, H*W)     input, channels-first, spatial flattened
    skip_ref,    # (1, Ch, Lpad)   skip connection, PRE-PADDED padded-flat layout
    upad_ref,    # (H*W, Lpad)     fused bilinear-upsample + zero-pad matrix
    mask_ref,    # (1, Lext)       1.0 on valid (non stride-pad) output columns
    wb_ref,      # (Ch, 3*K9+3)    packed [w1 | w2_blocked | w3_padded | b1 b2 b3]
    o_ref,       # (1, Ch, Lext)   conv3 output in the extended (row stride Wp) frame
    pad1_ref,    # VMEM (C,  Lpad) upsampled + padded conv1 input
    padh_ref,    # VMEM (Ch, Lpad) shared conv1-out / conv2-out padded frame
    col_ref,     # VMEM (K9, Lext) shared im2col scratch
    *, C, Ch, OH, OW, Wp, Lpad, Lext,
):
    f32 = jnp.float32
    K9 = 9 * C

    # ---- bilinear x2 upsample (align_corners=True) + zero-pad: one MXU matmul -------
    pad1_ref[...] = jnp.dot(x_ref[0], upad_ref[...], preferred_element_type=f32)

    # ---- zero ONLY the halo strips of padh that the interior store never touches ----
    halo = Wp + 1
    padh_ref[:, :halo] = jnp.zeros((Ch, halo), f32)
    padh_ref[:, (OH + 1) * Wp + 1:] = jnp.zeros((Ch, Lpad - (OH + 1) * Wp - 1), f32)

    mask = mask_ref[...]                          # (1, Lext)
    w1 = wb_ref[:, 0:K9]
    w2 = wb_ref[:, K9:2 * K9]
    w3 = wb_ref[:, 2 * K9:3 * K9]
    b1 = wb_ref[:, 3 * K9 + 0:3 * K9 + 1]
    b2 = wb_ref[:, 3 * K9 + 1:3 * K9 + 2]
    b3 = wb_ref[:, 3 * K9 + 2:3 * K9 + 3]

    def tap(k):                                   # lane offset of 3x3 tap k in the frame
        return (k // 3) * Wp + (k % 3)

    # ---- conv1 (no ReLU): im2col = 9 aligned (C, Lext) copies ------------------------
    for k in range(9):
        off = tap(k)
        col_ref[k * C:(k + 1) * C, :] = pad1_ref[:, off:off + Lext]
    ext1 = jnp.dot(w1, col_ref[...], preferred_element_type=f32) + b1
    padh_ref[:, Wp + 1:Wp + 1 + Lext] = ext1 * mask

    # ---- conv2 + ReLU: col rows [0:9*Ch) = conv1-out taps, [9*Ch:9*C) = skip taps ----
    # (the channel concat never materializes: w2 is stored in this block layout)
    for k in range(9):
        off = tap(k)
        col_ref[k * Ch:(k + 1) * Ch, :] = padh_ref[:, off:off + Lext]
        col_ref[9 * Ch + k * Ch:9 * Ch + (k + 1) * Ch, :] = skip_ref[0, :, off:off + Lext]
    ext2 = jnp.maximum(jnp.dot(w2, col_ref[...], preferred_element_type=f32) + b2, 0.0)
    padh_ref[:, Wp + 1:Wp + 1 + Lext] = ext2 * mask     # reuse padh as conv2-out frame

    # ---- conv3 + ReLU: 8-sublane-aligned tap copies; stale rows hit zero weights -----
    for k in range(9):
        off = tap(k)
        col_ref[k * C:k * C + Ch, :] = padh_ref[:, off:off + Lext]
    ext3 = jnp.maximum(jnp.dot(w3, col_ref[...], preferred_element_type=f32) + b3, 0.0)
    o_ref[0] = ext3.astype(o_ref.dtype)


# ----------------------------------------------------------------------------
# Host-side constants (trace-time numpy; become jit constants).
# ----------------------------------------------------------------------------
def _upsample_matrix(in_size, out_size):
    """(out_size, in_size) bilinear interpolation matrix, align_corners=True."""
    U = np.zeros((out_size, in_size), np.float64)
    if out_size == 1:
        src = np.zeros((1,), np.float64)
    else:
        src = np.arange(out_size, dtype=np.float64) * (in_size - 1) / (out_size - 1)
    i0 = np.floor(src).astype(np.int64)
    i1 = np.minimum(i0 + 1, in_size - 1)
    f = src - i0
    rows = np.arange(out_size)
    U[rows, i0] += 1.0 - f
    U[rows, i1] += f
    return U


def _make_constants(H, W):
    OH, OW = 2 * H, 2 * W
    Hp, Wp = OH + 2, OW + 2
    Lext = OH * Wp            # extended output frame (rows of stride Wp)
    Lpad = Hp * Wp + 2        # padded-flat frame (+2 so every tap slice stays in bounds)

    Uh = _upsample_matrix(H, OH)          # (OH, H)
    Uw = _upsample_matrix(W, OW)          # (OW, W)
    U4 = np.zeros((H, W, Hp, Wp), np.float64)
    U4[:, :, 1:OH + 1, 1:OW + 1] = np.einsum("oh,pw->hwop", Uh, Uw)
    upad = np.zeros((H * W, Lpad), np.float32)
    upad[:, :Hp * Wp] = U4.reshape(H * W, Hp * Wp)

    q = np.arange(Lext)
    mask = ((q % Wp) < OW).astype(np.float32).reshape(1, Lext)
    return upad, mask, OH, OW, Wp, Lpad, Lext


# ----------------------------------------------------------------------------
# Parameter packing: one (Ch, 27*C+3) operand in the kernel's layouts.
# ----------------------------------------------------------------------------
def _pack_weights(params, C):
    Ch = C // 2

    def tapmajor(w):   # OIHW (cout, cin, 3, 3) -> (cout, 9*cin), col = (ky*3+kx)*cin + ci
        return jnp.transpose(w, (0, 2, 3, 1)).reshape(w.shape[0], -1)

    w1 = tapmajor(params["w1"])                                        # (Ch, 9*C)
    # conv2: block layout [all taps of conv1-out channels | all taps of skip channels]
    w2 = jnp.concatenate([tapmajor(params["w2"][:, :Ch]),
                          tapmajor(params["w2"][:, Ch:])], axis=1)     # (Ch, 9*C)
    # conv3: taps padded to an 8-channel stride (zero columns for the unused rows)
    w3t = jnp.transpose(params["w3"], (0, 2, 3, 1))                    # (Ch, 3, 3, Ch)
    w3 = jnp.pad(w3t, ((0, 0), (0, 0), (0, 0), (0, C - Ch))).reshape(Ch, 9 * C)
    b = jnp.stack([params["b1"], params["b2"], params["b3"]], axis=1)  # (Ch, 3)
    return jnp.concatenate([w1, w2, w3, b], axis=1).astype(jnp.float32)


# ----------------------------------------------------------------------------
# Forward pass: single fused pallas_call.
# ----------------------------------------------------------------------------
def expanding_block_forward(params, x_nchw, skip_nchw):
    N, C, H, W = x_nchw.shape
    Ch = C // 2
    upad_np, mask_np, OH, OW, Wp, Lpad, Lext = _make_constants(H, W)
    upad = jnp.asarray(upad_np)
    mask = jnp.asarray(mask_np)
    wb = _pack_weights(params, C)

    x_flat = x_nchw.reshape(N, C, H * W)               # free metadata reshape (NCHW kept)
    # Pre-pad the skip into the padded-flat layout (zero halo + 2 tail cols) so its
    # BlockSpec DMAs it straight into place -> no in-kernel concat loop.
    skip_pad = jnp.pad(skip_nchw, ((0, 0), (0, 0), (1, 1), (1, 1)))
    skip_pad = jnp.pad(skip_pad.reshape(N, Ch, (OH + 2) * Wp), ((0, 0), (0, 0), (0, 2)))

    kernel = functools.partial(
        _expanding_block_kernel,
        C=C, Ch=Ch, OH=OH, OW=OW, Wp=Wp, Lpad=Lpad, Lext=Lext,
    )
    const2d = lambda n: (0, 0)

    out_ext = pl.pallas_call(
        kernel,
        out_shape=jax.ShapeDtypeStruct((N, Ch, Lext), x_nchw.dtype),
        grid_spec=pltpu.PrefetchScalarGridSpec(
            num_scalar_prefetch=0,
            grid=(N,),
            in_specs=[
                pl.BlockSpec((1, C, H * W), lambda n: (n, 0, 0)),
                pl.BlockSpec((1, Ch, Lpad), lambda n: (n, 0, 0)),
                pl.BlockSpec((H * W, Lpad), const2d),
                pl.BlockSpec((1, Lext), const2d),
                pl.BlockSpec((Ch, 27 * C + 3), const2d),
            ],
            out_specs=pl.BlockSpec((1, Ch, Lext), lambda n: (n, 0, 0)),
            scratch_shapes=[
                pltpu.VMEM((C, Lpad), jnp.float32),       # pad1   (upsampled input)
                pltpu.VMEM((Ch, Lpad), jnp.float32),      # padh   (conv1-out / conv2-out)
                pltpu.VMEM((9 * C, Lext), jnp.float32),   # shared im2col
            ],
        ),
        compiler_params=pltpu.CompilerParams(dimension_semantics=("parallel",)),
    )(x_flat, skip_pad, upad, mask, wb)

    # Drop the 2 stride-padding columns of each output row (tiny XLA slice).
    return out_ext.reshape(N, Ch, OH, Wp)[:, :, :, :OW]


# ----------------------------------------------------------------------------
# Parameters (natural OIHW layout; packing to kernel layout happens in the wrapper).
# ----------------------------------------------------------------------------
def make_params(key, input_channels):
    C = input_channels
    Ch = C // 2
    k1, k2, k3, k4, k5, k6 = jax.random.split(key, 6)
    return {
        "w1": 0.1 * jax.random.normal(k1, (Ch, C, 3, 3), jnp.float32),
        "w2": 0.1 * jax.random.normal(k2, (Ch, C, 3, 3), jnp.float32),
        "w3": 0.1 * jax.random.normal(k3, (Ch, Ch, 3, 3), jnp.float32),
        "b1": 0.1 * jax.random.normal(k4, (Ch,), jnp.float32),
        "b2": 0.1 * jax.random.normal(k5, (Ch,), jnp.float32),
        "b3": 0.1 * jax.random.normal(k6, (Ch,), jnp.float32),
    }


# ----------------------------------------------------------------------------
# Pure-JAX reference (lax.conv, NCHW) to validate the fused Pallas kernel.
# ----------------------------------------------------------------------------
def _conv3x3_ref(x_nchw, w_oihw, bias, relu):
    y = lax.conv_general_dilated(
        x_nchw, w_oihw, (1, 1), "SAME",
        dimension_numbers=("NCHW", "OIHW", "NCHW"),
    ) + bias.reshape(1, -1, 1, 1)
    return jnp.maximum(y, 0.0) if relu else y


def _upsample2x_ref(x):   # NCHW, bilinear, align_corners=True
    N, C, H, W = x.shape
    OH, OW = 2 * H, 2 * W

    def coords(n, o):
        src = jnp.arange(o, dtype=jnp.float32) * ((n - 1) / (o - 1))
        i0 = jnp.floor(src).astype(jnp.int32)
        i1 = jnp.minimum(i0 + 1, n - 1)
        return i0, i1, src - i0.astype(jnp.float32)

    y0, y1, fy = coords(H, OH)
    x0, x1, fx = coords(W, OW)
    xh = (x[:, :, y0, :] * (1.0 - fy)[None, None, :, None]
          + x[:, :, y1, :] * fy[None, None, :, None])
    return (xh[:, :, :, x0] * (1.0 - fx)[None, None, None, :]
            + xh[:, :, :, x1] * fx[None, None, None, :])


def expanding_block_ref(params, x_nchw, skip_nchw):
    x = _upsample2x_ref(x_nchw)
    x = _conv3x3_ref(x, params["w1"], params["b1"], relu=False)
    x = jnp.concatenate([x, skip_nchw], axis=1)
    x = _conv3x3_ref(x, params["w2"], params["b2"], relu=True)
    x = _conv3x3_ref(x, params["w3"], params["b3"], relu=True)
    return x


if __name__ == "__main__":
    key = jax.random.PRNGKey(0)
    k_x, k_skip, k_p = jax.random.split(key, 3)

    N, C, H, W = 2, 8, 8, 8                       # input_channels = 8
    x = jax.random.normal(k_x, (N, C, H, W), jnp.float32)
    # skip connection: (N, C//2, 2H, 2W), matching U-Net semantics
    skip = jax.random.normal(k_skip, (N, C // 2, 2 * H, 2 * W), jnp.float32)
    params = make_params(k_p, C)

    fwd = jax.jit(expanding_block_forward)
    out = jax.block_until_ready(fwd(params, x, skip))
    ref = jax.block_until_ready(expanding_block_ref(params, x, skip))

    assert out.shape == (N, C // 2, 2 * H, 2 * W), out.shape
    # Tolerance covers MXU-vs-XLA default f32 matmul/conv precision differences.
    np.testing.assert_allclose(np.asarray(out), np.asarray(ref), rtol=2e-2, atol=2e-2)
    print("KERNEL_OK")
</pallas_src>

<mosaic_0001>
module attributes {stable_mosaic.version = 11 : i64} {
  func.func @_expanding_block_kernel(%arg0: i32, %arg1: memref<1x8x64xf32, #tpu.memory_space<vmem>>, %arg2: memref<1x4x326xf32, #tpu.memory_space<vmem>>, %arg3: memref<64x326xf32, #tpu.memory_space<vmem>>, %arg4: memref<1x288xf32, #tpu.memory_space<vmem>>, %arg5: memref<4x219xf32, #tpu.memory_space<vmem>>, %arg6: memref<1x4x288xf32, #tpu.memory_space<vmem>>, %arg7: memref<8x326xf32, #tpu.memory_space<vmem>>, %arg8: memref<4x326xf32, #tpu.memory_space<vmem>>, %arg9: memref<72x288xf32, #tpu.memory_space<vmem>>) attributes {dimension_semantics = [#tpu.dimension_semantics<parallel>], iteration_bounds = array<i64: 2>, scalar_prefetch = 0 : i64, scratch_operands = 3 : i64, tpu.core_type = #tpu.core_type<tc>, window_params = [{transform_indices = @transform_0, window_bounds = array<i64: 1, 8, 64>}, {transform_indices = @transform_1, window_bounds = array<i64: 1, 4, 326>}, {pipeline_mode = #tpu.pipeline_mode<synchronous>, transform_indices = @transform_2, window_bounds = array<i64: 64, 326>}, {pipeline_mode = #tpu.pipeline_mode<synchronous>, transform_indices = @transform_3, window_bounds = array<i64: 1, 288>}, {pipeline_mode = #tpu.pipeline_mode<synchronous>, transform_indices = @transform_4, window_bounds = array<i64: 4, 219>}, {transform_indices = @transform_5, window_bounds = array<i64: 1, 4, 288>}]} {
    %c0 = arith.constant 0 : index
    %c0_0 = arith.constant 0 : index
    %c0_1 = arith.constant 0 : index
    %0 = vector.load %arg1[%c0, %c0_0, %c0_1] : memref<1x8x64xf32, #tpu.memory_space<vmem>>, vector<1x8x64xf32>
    %1 = vector.shape_cast %0 : vector<1x8x64xf32> to vector<8x64xf32>
    %c0_2 = arith.constant 0 : index
    %c0_3 = arith.constant 0 : index
    %2 = vector.load %arg3[%c0_2, %c0_3] : memref<64x326xf32, #tpu.memory_space<vmem>>, vector<64x326xf32>
    %cst = arith.constant dense<0.000000e+00> : vector<8x326xf32>
    %3 = tpu.matmul %1, %2, %cst {dimension_numbers = #tpu.dot_dimension_numbers<[1], [0], [0], [1], [0, 0, 1, 1], [], []>} : vector<8x64xf32>, vector<64x326xf32>, vector<8x326xf32> -> vector<8x326xf32>
    %c0_4 = arith.constant 0 : index
    %c0_5 = arith.constant 0 : index
    %4 = vector.load %arg7[%c0_4, %c0_5] : memref<8x326xf32, #tpu.memory_space<vmem>>, vector<8x326xf32>
    tpu.vector_store %arg7[%c0_4, %c0_5], %3 {strides = array<i32>} : memref<8x326xf32, #tpu.memory_space<vmem>>, vector<8x326xf32>,
    %cst_6 = arith.constant 0.000000e+00 : f32
    %5 = vector.broadcast %cst_6 : f32 to vector<4x19xf32>
    %c0_7 = arith.constant 0 : index
    %c0_8 = arith.constant 0 : index
    %6 = vector.load %arg8[%c0_7, %c0_8] : memref<4x326xf32, #tpu.memory_space<vmem>>, vector<4x19xf32>
    tpu.vector_store %arg8[%c0_7, %c0_8], %5 {strides = array<i32>} : memref<4x326xf32, #tpu.memory_space<vmem>>, vector<4x19xf32>,
    %cst_9 = arith.constant 0.000000e+00 : f32
    %7 = vector.broadcast %cst_9 : f32 to vector<4x19xf32>
    %c0_10 = arith.constant 0 : index
    %c307 = arith.constant 307 : index
    %8 = vector.load %arg8[%c0_10, %c307] : memref<4x326xf32, #tpu.memory_space<vmem>>, vector<4x19xf32>
    tpu.vector_store %arg8[%c0_10, %c307], %7 {strides = array<i32>} : memref<4x326xf32, #tpu.memory_space<vmem>>, vector<4x19xf32>,
    %c0_11 = arith.constant 0 : index
    %c0_12 = arith.constant 0 : index
    %9 = vector.load %arg4[%c0_11, %c0_12] : memref<1x288xf32, #tpu.memory_space<vmem>>, vector<1x288xf32>
    %c0_13 = arith.constant 0 : index
    %c0_14 = arith.constant 0 : index
    %10 = vector.load %arg5[%c0_13, %c0_14] : memref<4x219xf32, #tpu.memory_space<vmem>>, vector<4x72xf32>
    %c0_15 = arith.constant 0 : index
    %c72 = arith.constant 72 : index
    %11 = vector.load %arg5[%c0_15, %c72] : memref<4x219xf32, #tpu.memory_space<vmem>>, vector<4x72xf32>
    %c0_16 = arith.constant 0 : index
    %c144 = arith.constant 144 : index
    %12 = vector.load %arg5[%c0_16, %c144] : memref<4x219xf32, #tpu.memory_space<vmem>>, vector<4x72xf32>
    %c0_17 = arith.constant 0 : index
    %c216 = arith.constant 216 : index
    %13 = vector.load %arg5[%c0_17, %c216] : memref<4x219xf32, #tpu.memory_space<vmem>>, vector<4x1xf32>
    %c0_18 = arith.constant 0 : index
    %c217 = arith.constant 217 : index
    %14 = vector.load %arg5[%c0_18, %c217] : memref<4x219xf32, #tpu.memory_space<vmem>>, vector<4x1xf32>
    %c0_19 = arith.constant 0 : index
    %c218 = arith.constant 218 : index
    %15 = vector.load %arg5[%c0_19, %c218] : memref<4x219xf32, #tpu.memory_space<vmem>>, vector<4x1xf32>
    %c0_20 = arith.constant 0 : index
    %c0_21 = arith.constant 0 : index
    %16 = vector.load %arg7[%c0_20, %c0_21] : memref<8x326xf32, #tpu.memory_space<vmem>>, vector<8x288xf32>
    %c0_22 = arith.constant 0 : index
    %c0_23 = arith.constant 0 : index
    %17 = vector.load %arg9[%c0_22, %c0_23] : memref<72x288xf32, #tpu.memory_space<vmem>>, vector<8x288xf32>
    tpu.vector_store %arg9[%c0_22, %c0_23], %16 {strides = array<i32>} : memref<72x288xf32, #tpu.memory_space<vmem>>, vector<8x288xf32>,
    %c0_24 = arith.constant 0 : index
    %c1 = arith.constant 1 : index
    %18 = vector.load %arg7[%c0_24, %c1] : memref<8x326xf32, #tpu.memory_space<vmem>>, vector<8x288xf32>
    %c8 = arith.constant 8 : index
    %c0_25 = arith.constant 0 : index
    %19 = vector.load %arg9[%c8, %c0_25] : memref<72x288xf32, #tpu.memory_space<vmem>>, vector<8x288xf32>
    tpu.vector_store %arg9[%c8, %c0_25], %18 {strides = array<i32>} : memref<72x288xf32, #tpu.memory_space<vmem>>, vector<8x288xf32>,
    %c0_26 = arith.constant 0 : index
    %c2 = arith.constant 2 : index
    %20 = vector.load %arg7[%c0_26, %c2] : memref<8x326xf32, #tpu.memory_space<vmem>>, vector<8x288xf32>
    %c16 = arith.constant 16 : index
    %c0_27 = arith.constant 0 : index
    %21 = vector.load %arg9[%c16, %c0_27] : memref<72x288xf32, #tpu.memory_space<vmem>>, vector<8x288xf32>
    tpu.vector_store %arg9[%c16, %c0_27], %20 {strides = array<i32>} : memref<72x288xf32, #tpu.memory_space<vmem>>, vector<8x288xf32>,
    %c0_28 = arith.constant 0 : index
    %c18 = arith.constant 18 : index
    %22 = vector.load %arg7[%c0_28, %c18] : memref<8x326xf32, #tpu.memory_space<vmem>>, vector<8x288xf32>
    %c24 = arith.constant 24 : index
    %c0_29 = arith.constant 0 : index
    %23 = vector.load %arg9[%c24, %c0_29] : memref<72x288xf32, #tpu.memory_space<vmem>>, vector<8x288xf32>
    tpu.vector_store %arg9[%c24, %c0_29], %22 {strides = array<i32>} : memref<72x288xf32, #tpu.memory_space<vmem>>, vector<8x288xf32>,
    %c0_30 = arith.constant 0 : index
    %c19 = arith.constant 19 : index
    %24 = vector.load %arg7[%c0_30, %c19] : memref<8x326xf32, #tpu.memory_space<vmem>>, vector<8x288xf32>
    %c32 = arith.constant 32 : index
    %c0_31 = arith.constant 0 : index
    %25 = vector.load %arg9[%c32, %c0_31] : memref<72x288xf32, #tpu.memory_space<vmem>>, vector<8x288xf32>
    tpu.vector_store %arg9[%c32, %c0_31], %24 {strides = array<i32>} : memref<72x288xf32, #tpu.memory_space<vmem>>, vector<8x288xf32>,
    %c0_32 = arith.constant 0 : index
    %c20 = arith.constant 20 : index
    %26 = vector.load %arg7[%c0_32, %c20] : memref<8x326xf32, #tpu.memory_space<vmem>>, vector<8x288xf32>
    %c40 = arith.constant 40 : index
    %c0_33 = arith.constant 0 : index
    %27 = vector.load %arg9[%c40, %c0_33] : memref<72x288xf32, #tpu.memory_space<vmem>>, vector<8x288xf32>
    tpu.vector_store %arg9[%c40, %c0_33], %26 {strides = array<i32>} : memref<72x288xf32, #tpu.memory_space<vmem>>, vector<8x288xf32>,
    %c0_34 = arith.constant 0 : index
    %c36 = arith.constant 36 : index
    %28 = vector.load %arg7[%c0_34, %c36] : memref<8x326xf32, #tpu.memory_space<vmem>>, vector<8x288xf32>
    %c48 = arith.constant 48 : index
    %c0_35 = arith.constant 0 : index
    %29 = vector.load %arg9[%c48, %c0_35] : memref<72x288xf32, #tpu.memory_space<vmem>>, vector<8x288xf32>
    tpu.vector_store %arg9[%c48, %c0_35], %28 {strides = array<i32>} : memref<72x288xf32, #tpu.memory_space<vmem>>, vector<8x288xf32>,
    %c0_36 = arith.constant 0 : index
    %c37 = arith.constant 37 : index
    %30 = vector.load %arg7[%c0_36, %c37] : memref<8x326xf32, #tpu.memory_space<vmem>>, vector<8x288xf32>
    %c56 = arith.constant 56 : index
    %c0_37 = arith.constant 0 : index
    %31 = vector.load %arg9[%c56, %c0_37] : memref<72x288xf32, #tpu.memory_space<vmem>>, vector<8x288xf32>
    tpu.vector_store %arg9[%c56, %c0_37], %30 {strides = array<i32>} : memref<72x288xf32, #tpu.memory_space<vmem>>, vector<8x288xf32>,
    %c0_38 = arith.constant 0 : index
    %c38 = arith.constant 38 : index
    %32 = vector.load %arg7[%c0_38, %c38] : memref<8x326xf32, #tpu.memory_space<vmem>>, vector<8x288xf32>
    %c64 = arith.constant 64 : index
    %c0_39 = arith.constant 0 : index
    %33 = vector.load %arg9[%c64, %c0_39] : memref<72x288xf32, #tpu.memory_space<vmem>>, vector<8x288xf32>
    tpu.vector_store %arg9[%c64, %c0_39], %32 {strides = array<i32>} : memref<72x288xf32, #tpu.memory_space<vmem>>, vector<8x288xf32>,
    %c0_40 = arith.constant 0 : index
    %c0_41 = arith.constant 0 : index
    %34 = vector.load %arg9[%c0_40, %c0_41] : memref<72x288xf32, #tpu.memory_space<vmem>>, vector<72x288xf32>
    %cst_42 = arith.constant dense<0.000000e+00> : vector<4x288xf32>
    %35 = tpu.matmul %10, %34, %cst_42 {dimension_numbers = #tpu.dot_dimension_numbers<[1], [0], [0], [1], [0, 0, 1, 1], [], []>} : vector<4x72xf32>, vector<72x288xf32>, vector<4x288xf32> -> vector<4x288xf32>
    %36 = vector.broadcast %13 : vector<4x1xf32> to vector<4x288xf32>
    %37 = arith.addf %35, %36 : vector<4x288xf32>
    %38 = vector.broadcast %9 : vector<1x288xf32> to vector<4x288xf32>
    %39 = arith.mulf %37, %38 : vector<4x288xf32>
    %c0_43 = arith.constant 0 : index
    %c19_44 = arith.constant 19 : index
    %40 = vector.load %arg8[%c0_43, %c19_44] : memref<4x326xf32, #tpu.memory_space<vmem>>, vector<4x288xf32>
    tpu.vector_store %arg8[%c0_43, %c19_44], %39 {strides = array<i32>} : memref<4x326xf32, #tpu.memory_space<vmem>>, vector<4x288xf32>,
    %c0_45 = arith.constant 0 : index
    %c0_46 = arith.constant 0 : index
    %41 = vector.load %arg8[%c0_45, %c0_46] : memref<4x326xf32, #tpu.memory_space<vmem>>, vector<4x288xf32>
    %c0_47 = arith.constant 0 : index
    %c0_48 = arith.constant 0 : index
    %42 = vector.load %arg9[%c0_47, %c0_48] : memref<72x288xf32, #tpu.memory_space<vmem>>, vector<4x288xf32>
    tpu.vector_store %arg9[%c0_47, %c0_48], %41 {strides = array<i32>} : memref<72x288xf32, #tpu.memory_space<vmem>>, vector<4x288xf32>,
    %c0_49 = arith.constant 0 : index
    %c0_50 = arith.constant 0 : index
    %c0_51 = arith.constant 0 : index
    %43 = vector.load %arg2[%c0_49, %c0_50, %c0_51] : memref<1x4x326xf32, #tpu.memory_space<vmem>>, vector<1x4x288xf32>
    %44 = vector.shape_cast %43 : vector<1x4x288xf32> to vector<4x288xf32>
    %c36_52 = arith.constant 36 : index
    %c0_53 = arith.constant 0 : index
    %45 = vector.load %arg9[%c36_52, %c0_53] : memref<72x288xf32, #tpu.memory_space<vmem>>, vector<4x288xf32>
    tpu.vector_store %arg9[%c36_52, %c0_53], %44 {strides = array<i32>} : memref<72x288xf32, #tpu.memory_space<vmem>>, vector<4x288xf32>,
    %c0_54 = arith.constant 0 : index
    %c1_55 = arith.constant 1 : index
    %46 = vector.load %arg8[%c0_54, %c1_55] : memref<4x326xf32, #tpu.memory_space<vmem>>, vector<4x288xf32>
    %c4 = arith.constant 4 : index
    %c0_56 = arith.constant 0 : index
    %47 = vector.load %arg9[%c4, %c0_56] : memref<72x288xf32, #tpu.memory_space<vmem>>, vector<4x288xf32>
    tpu.vector_store %arg9[%c4, %c0_56], %46 {strides = array<i32>} : memref<72x288xf32, #tpu.memory_space<vmem>>, vector<4x288xf32>,
    %c0_57 = arith.constant 0 : index
    %c0_58 = arith.constant 0 : index
    %c1_59 = arith.constant 1 : index
    %48 = vector.load %arg2[%c0_57, %c0_58, %c1_59] : memref<1x4x326xf32, #tpu.memory_space<vmem>>, vector<1x4x288xf32>
    %49 = vector.shape_cast %48 : vector<1x4x288xf32> to vector<4x288xf32>
    %c40_60 = arith.constant 40 : index
    %c0_61 = arith.constant 0 : index
    %50 = vector.load %arg9[%c40_60, %c0_61] : memref<72x288xf32, #tpu.memory_space<vmem>>, vector<4x288xf32>
    tpu.vector_store %arg9[%c40_60, %c0_61], %49 {strides = array<i32>} : memref<72x288xf32, #tpu.memory_space<vmem>>, vector<4x288xf32>,
    %c0_62 = arith.constant 0 : index
    %c2_63 = arith.constant 2 : index
    %51 = vector.load %arg8[%c0_62, %c2_63] : memref<4x326xf32, #tpu.memory_space<vmem>>, vector<4x288xf32>
    %c8_64 = arith.constant 8 : index
    %c0_65 = arith.constant 0 : index
    %52 = vector.load %arg9[%c8_64, %c0_65] : memref<72x288xf32, #tpu.memory_space<vmem>>, vector<4x288xf32>
    tpu.vector_store %arg9[%c8_64, %c0_65], %51 {strides = array<i32>} : memref<72x288xf32, #tpu.memory_space<vmem>>, vector<4x288xf32>,
    %c0_66 = arith.constant 0 : index
    %c0_67 = arith.constant 0 : index
    %c2_68 = arith.constant 2 : index
    %53 = vector.load %arg2[%c0_66, %c0_67, %c2_68] : memref<1x4x326xf32, #tpu.memory_space<vmem>>, vector<1x4x288xf32>
    %54 = vector.shape_cast %53 : vector<1x4x288xf32> to vector<4x288xf32>
    %c44 = arith.constant 44 : index
    %c0_69 = arith.constant 0 : index
    %55 = vector.load %arg9[%c44, %c0_69] : memref<72x288xf32, #tpu.memory_space<vmem>>, vector<4x288xf32>
    tpu.vector_store %arg9[%c44, %c0_69], %54 {strides = array<i32>} : memref<72x288xf32, #tpu.memory_space<vmem>>, vector<4x288xf32>,
    %c0_70 = arith.constant 0 : index
    %c18_71 = arith.constant 18 : index
    %56 = vector.load %arg8[%c0_70, %c18_71] : memref<4x326xf32, #tpu.memory_space<vmem>>, vector<4x288xf32>
    %c12 = arith.constant 12 : index
    %c0_72 = arith.constant 0 : index
    %57 = vector.load %arg9[%c12, %c0_72] : memref<72x288xf32, #tpu.memory_space<vmem>>, vector<4x288xf32>
    tpu.vector_store %arg9[%c12, %c0_72], %56 {strides = array<i32>} : memref<72x288xf32, #tpu.memory_space<vmem>>, vector<4x288xf32>,
    %c0_73 = arith.constant 0 : index
    %c0_74 = arith.constant 0 : index
    %c18_75 = arith.constant 18 : index
    %58 = vector.load %arg2[%c0_73, %c0_74, %c18_75] : memref<1x4x326xf32, #tpu.memory_space<vmem>>, vector<1x4x288xf32>
    %59 = vector.shape_cast %58 : vector<1x4x288xf32> to vector<4x288xf32>
    %c48_76 = arith.constant 48 : index
    %c0_77 = arith.constant 0 : index
    %60 = vector.load %arg9[%c48_76, %c0_77] : memref<72x288xf32, #tpu.memory_space<vmem>>, vector<4x288xf32>
    tpu.vector_store %arg9[%c48_76, %c0_77], %59 {strides = array<i32>} : memref<72x288xf32, #tpu.memory_space<vmem>>, vector<4x288xf32>,
    %c0_78 = arith.constant 0 : index
    %c19_79 = arith.constant 19 : index
    %61 = vector.load %arg8[%c0_78, %c19_79] : memref<4x326xf32, #tpu.memory_space<vmem>>, vector<4x288xf32>
    %c16_80 = arith.constant 16 : index
    %c0_81 = arith.constant 0 : index
    %62 = vector.load %arg9[%c16_80, %c0_81] : memref<72x288xf32, #tpu.memory_space<vmem>>, vector<4x288xf32>
    tpu.vector_store %arg9[%c16_80, %c0_81], %61 {strides = array<i32>} : memref<72x288xf32, #tpu.memory_space<vmem>>, vector<4x288xf32>,
    %c0_82 = arith.constant 0 : index
    %c0_83 = arith.constant 0 : index
    %c19_84 = arith.constant 19 : index
    %63 = vector.load %arg2[%c0_82, %c0_83, %c19_84] : memref<1x4x326xf32, #tpu.memory_space<vmem>>, vector<1x4x288xf32>
    %64 = vector.shape_cast %63 : vector<1x4x288xf32> to vector<4x288xf32>
    %c52 = arith.constant 52 : index
    %c0_85 = arith.constant 0 : index
    %65 = vector.load %arg9[%c52, %c0_85] : memref<72x288xf32, #tpu.memory_space<vmem>>, vector<4x288xf32>
    tpu.vector_store %arg9[%c52, %c0_85], %64 {strides = array<i32>} : memref<72x288xf32, #tpu.memory_space<vmem>>, vector<4x288xf32>,
    %c0_86 = arith.constant 0 : index
    %c20_87 = arith.constant 20 : index
    %66 = vector.load %arg8[%c0_86, %c20_87] : memref<4x326xf32, #tpu.memory_space<vmem>>, vector<4x288xf32>
    %c20_88 = arith.constant 20 : index
    %c0_89 = arith.constant 0 : index
    %67 = vector.load %arg9[%c20_88, %c0_89] : memref<72x288xf32, #tpu.memory_space<vmem>>, vector<4x288xf32>
    tpu.vector_store %arg9[%c20_88, %c0_89], %66 {strides = array<i32>} : memref<72x288xf32, #tpu.memory_space<vmem>>, vector<4x288xf32>,
    %c0_90 = arith.constant 0 : index
    %c0_91 = arith.constant 0 : index
    %c20_92 = arith.constant 20 : index
    %68 = vector.load %arg2[%c0_90, %c0_91, %c20_92] : memref<1x4x326xf32, #tpu.memory_space<vmem>>, vector<1x4x288xf32>
    %69 = vector.shape_cast %68 : vector<1x4x288xf32> to vector<4x288xf32>
    %c56_93 = arith.constant 56 : index
    %c0_94 = arith.constant 0 : index
    %70 = vector.load %arg9[%c56_93, %c0_94] : memref<72x288xf32, #tpu.memory_space<vmem>>, vector<4x288xf32>
    tpu.vector_store %arg9[%c56_93, %c0_94], %69 {strides = array<i32>} : memref<72x288xf32, #tpu.memory_space<vmem>>, vector<4x288xf32>,
    %c0_95 = arith.constant 0 : index
    %c36_96 = arith.constant 36 : index
    %71 = vector.load %arg8[%c0_95, %c36_96] : memref<4x326xf32, #tpu.memory_space<vmem>>, vector<4x288xf32>
    %c24_97 = arith.constant 24 : index
    %c0_98 = arith.constant 0 : index
    %72 = vector.load %arg9[%c24_97, %c0_98] : memref<72x288xf32, #tpu.memory_space<vmem>>, vector<4x288xf32>
    tpu.vector_store %arg9[%c24_97, %c0_98], %71 {strides = array<i32>} : memref<72x288xf32, #tpu.memory_space<vmem>>, vector<4x288xf32>,
    %c0_99 = arith.constant 0 : index
    %c0_100 = arith.constant 0 : index
    %c36_101 = arith.constant 36 : index
    %73 = vector.load %arg2[%c0_99, %c0_100, %c36_101] : memref<1x4x326xf32, #tpu.memory_space<vmem>>, vector<1x4x288xf32>
    %74 = vector.shape_cast %73 : vector<1x4x288xf32> to vector<4x288xf32>
    %c60 = arith.constant 60 : index
    %c0_102 = arith.constant 0 : index
    %75 = vector.load %arg9[%c60, %c0_102] : memref<72x288xf32, #tpu.memory_space<vmem>>, vector<4x288xf32>
    tpu.vector_store %arg9[%c60, %c0_102], %74 {strides = array<i32>} : memref<72x288xf32, #tpu.memory_space<vmem>>, vector<4x288xf32>,
    %c0_103 = arith.constant 0 : index
    %c37_104 = arith.constant 37 : index
    %76 = vector.load %arg8[%c0_103, %c37_104] : memref<4x326xf32, #tpu.memory_space<vmem>>, vector<4x288xf32>
    %c28 = arith.constant 28 : index
    %c0_105 = arith.constant 0 : index
    %77 = vector.load %arg9[%c28, %c0_105] : memref<72x288xf32, #tpu.memory_space<vmem>>, vector<4x288xf32>
    tpu.vector_store %arg9[%c28, %c0_105], %76 {strides = array<i32>} : memref<72x288xf32, #tpu.memory_space<vmem>>, vector<4x288xf32>,
    %c0_106 = arith.constant 0 : index
    %c0_107 = arith.constant 0 : index
    %c37_108 = arith.constant 37 : index
    %78 = vector.load %arg2[%c0_106, %c0_107, %c37_108] : memref<1x4x326xf32, #tpu.memory_space<vmem>>, vector<1x4x288xf32>
    %79 = vector.shape_cast %78 : vector<1x4x288xf32> to vector<4x288xf32>
    %c64_109 = arith.constant 64 : index
    %c0_110 = arith.constant 0 : index
    %80 = vector.load %arg9[%c64_109, %c0_110] : memref<72x288xf32, #tpu.memory_space<vmem>>, vector<4x288xf32>
    tpu.vector_store %arg9[%c64_109, %c0_110], %79 {strides = array<i32>} : memref<72x288xf32, #tpu.memory_space<vmem>>, vector<4x288xf32>,
    %c0_111 = arith.constant 0 : index
    %c38_112 = arith.constant 38 : index
    %81 = vector.load %arg8[%c0_111, %c38_112] : memref<4x326xf32, #tpu.memory_space<vmem>>, vector<4x288xf32>
    %c32_113 = arith.constant 32 : index
    %c0_114 = arith.constant 0 : index
    %82 = vector.load %arg9[%c32_113, %c0_114] : memref<72x288xf32, #tpu.memory_space<vmem>>, vector<4x288xf32>
    tpu.vector_store %arg9[%c32_113, %c0_114], %81 {strides = array<i32>} : memref<72x288xf32, #tpu.memory_space<vmem>>, vector<4x288xf32>,
    %c0_115 = arith.constant 0 : index
    %c0_116 = arith.constant 0 : index
    %c38_117 = arith.constant 38 : index
    %83 = vector.load %arg2[%c0_115, %c0_116, %c38_117] : memref<1x4x326xf32, #tpu.memory_space<vmem>>, vector<1x4x288xf32>
    %84 = vector.shape_cast %83 : vector<1x4x288xf32> to vector<4x288xf32>
    %c68 = arith.constant 68 : index
    %c0_118 = arith.constant 0 : index
    %85 = vector.load %arg9[%c68, %c0_118] : memref<72x288xf32, #tpu.memory_space<vmem>>, vector<4x288xf32>
    tpu.vector_store %arg9[%c68, %c0_118], %84 {strides = array<i32>} : memref<72x288xf32, #tpu.memory_space<vmem>>, vector<4x288xf32>,
    %c0_119 = arith.constant 0 : index
    %c0_120 = arith.constant 0 : index
    %86 = vector.load %arg9[%c0_119, %c0_120] : memref<72x288xf32, #tpu.memory_space<vmem>>, vector<72x288xf32>
    %cst_121 = arith.constant dense<0.000000e+00> : vector<4x288xf32>
    %87 = tpu.matmul %11, %86, %cst_121 {dimension_numbers = #tpu.dot_dimension_numbers<[1], [0], [0], [1], [0, 0, 1, 1], [], []>} : vector<4x72xf32>, vector<72x288xf32>, vector<4x288xf32> -> vector<4x288xf32>
    %88 = vector.broadcast %14 : vector<4x1xf32> to vector<4x288xf32>
    %89 = arith.addf %87, %88 : vector<4x288xf32>
    %cst_122 = arith.constant 0.000000e+00 : f32
    %90 = vector.broadcast %cst_122 : f32 to vector<4x288xf32>
    %91 = arith.maximumf %89, %90 : vector<4x288xf32>
    %92 = vector.broadcast %9 : vector<1x288xf32> to vector<4x288xf32>
    %93 = arith.mulf %91, %92 : vector<4x288xf32>
    %c0_123 = arith.constant 0 : index
    %c19_124 = arith.constant 19 : index
    %94 = vector.load %arg8[%c0_123, %c19_124] : memref<4x326xf32, #tpu.memory_space<vmem>>, vector<4x288xf32>
    tpu.vector_store %arg8[%c0_123, %c19_124], %93 {strides = array<i32>} : memref<4x326xf32, #tpu.memory_space<vmem>>, vector<4x288xf32>,
    %c0_125 = arith.constant 0 : index
    %c0_126 = arith.constant 0 : index
    %95 = vector.load %arg8[%c0_125, %c0_126] : memref<4x326xf32, #tpu.memory_space<vmem>>, vector<4x288xf32>
    %c0_127 = arith.constant 0 : index
    %c0_128 = arith.constant 0 : index
    %96 = vector.load %arg9[%c0_127, %c0_128] : memref<72x288xf32, #tpu.memory_space<vmem>>, vector<4x288xf32>
    tpu.vector_store %arg9[%c0_127, %c0_128], %95 {strides = array<i32>} : memref<72x288xf32, #tpu.memory_space<vmem>>, vector<4x288xf32>,
    %c0_129 = arith.constant 0 : index
    %c1_130 = arith.constant 1 : index
    %97 = vector.load %arg8[%c0_129, %c1_130] : memref<4x326xf32, #tpu.memory_space<vmem>>, vector<4x288xf32>
    %c8_131 = arith.constant 8 : index
    %c0_132 = arith.constant 0 : index
    %98 = vector.load %arg9[%c8_131, %c0_132] : memref<72x288xf32, #tpu.memory_space<vmem>>, vector<4x288xf32>
    tpu.vector_store %arg9[%c8_131, %c0_132], %97 {strides = array<i32>} : memref<72x288xf32, #tpu.memory_space<vmem>>, vector<4x288xf32>,
    %c0_133 = arith.constant 0 : index
    %c2_134 = arith.constant 2 : index
    %99 = vector.load %arg8[%c0_133, %c2_134] : memref<4x326xf32, #tpu.memory_space<vmem>>, vector<4x288xf32>
    %c16_135 = arith.constant 16 : index
    %c0_136 = arith.constant 0 : index
    %100 = vector.load %arg9[%c16_135, %c0_136] : memref<72x288xf32, #tpu.memory_space<vmem>>, vector<4x288xf32>
    tpu.vector_store %arg9[%c16_135, %c0_136], %99 {strides = array<i32>} : memref<72x288xf32, #tpu.memory_space<vmem>>, vector<4x288xf32>,
    %c0_137 = arith.constant 0 : index
    %c18_138 = arith.constant 18 : index
    %101 = vector.load %arg8[%c0_137, %c18_138] : memref<4x326xf32, #tpu.memory_space<vmem>>, vector<4x288xf32>
    %c24_139 = arith.constant 24 : index
    %c0_140 = arith.constant 0 : index
    %102 = vector.load %arg9[%c24_139, %c0_140] : memref<72x288xf32, #tpu.memory_space<vmem>>, vector<4x288xf32>
    tpu.vector_store %arg9[%c24_139, %c0_140], %101 {strides = array<i32>} : memref<72x288xf32, #tpu.memory_space<vmem>>, vector<4x288xf32>,
    %c0_141 = arith.constant 0 : index
    %c19_142 = arith.constant 19 : index
    %103 = vector.load %arg8[%c0_141, %c19_142] : memref<4x326xf32, #tpu.memory_space<vmem>>, vector<4x288xf32>
    %c32_143 = arith.constant 32 : index
    %c0_144 = arith.constant 0 : index
    %104 = vector.load %arg9[%c32_143, %c0_144] : memref<72x288xf32, #tpu.memory_space<vmem>>, vector<4x288xf32>
    tpu.vector_store %arg9[%c32_143, %c0_144], %103 {strides = array<i32>} : memref<72x288xf32, #tpu.memory_space<vmem>>, vector<4x288xf32>,
    %c0_145 = arith.constant 0 : index
    %c20_146 = arith.constant 20 : index
    %105 = vector.load %arg8[%c0_145, %c20_146] : memref<4x326xf32, #tpu.memory_space<vmem>>, vector<4x288xf32>
    %c40_147 = arith.constant 40 : index
    %c0_148 = arith.constant 0 : index
    %106 = vector.load %arg9[%c40_147, %c0_148] : memref<72x288xf32, #tpu.memory_space<vmem>>, vector<4x288xf32>
    tpu.vector_store %arg9[%c40_147, %c0_148], %105 {strides = array<i32>} : memref<72x288xf32, #tpu.memory_space<vmem>>, vector<4x288xf32>,
    %c0_149 = arith.constant 0 : index
    %c36_150 = arith.constant 36 : index
    %107 = vector.load %arg8[%c0_149, %c36_150] : memref<4x326xf32, #tpu.memory_space<vmem>>, vector<4x288xf32>
    %c48_151 = arith.constant 48 : index
    %c0_152 = arith.constant 0 : index
    %108 = vector.load %arg9[%c48_151, %c0_152] : memref<72x288xf32, #tpu.memory_space<vmem>>, vector<4x288xf32>
    tpu.vector_store %arg9[%c48_151, %c0_152], %107 {strides = array<i32>} : memref<72x288xf32, #tpu.memory_space<vmem>>, vector<4x288xf32>,
    %c0_153 = arith.constant 0 : index
    %c37_154 = arith.constant 37 : index
    %109 = vector.load %arg8[%c0_153, %c37_154] : memref<4x326xf32, #tpu.memory_space<vmem>>, vector<4x288xf32>
    %c56_155 = arith.constant 56 : index
    %c0_156 = arith.constant 0 : index
    %110 = vector.load %arg9[%c56_155, %c0_156] : memref<72x288xf32, #tpu.memory_space<vmem>>, vector<4x288xf32>
    tpu.vector_store %arg9[%c56_155, %c0_156], %109 {strides = array<i32>} : memref<72x288xf32, #tpu.memory_space<vmem>>, vector<4x288xf32>,
    %c0_157 = arith.constant 0 : index
    %c38_158 = arith.constant 38 : index
    %111 = vector.load %arg8[%c0_157, %c38_158] : memref<4x326xf32, #tpu.memory_space<vmem>>, vector<4x288xf32>
    %c64_159 = arith.constant 64 : index
    %c0_160 = arith.constant 0 : index
    %112 = vector.load %arg9[%c64_159, %c0_160] : memref<72x288xf32, #tpu.memory_space<vmem>>, vector<4x288xf32>
    tpu.vector_store %arg9[%c64_159, %c0_160], %111 {strides = array<i32>} : memref<72x288xf32, #tpu.memory_space<vmem>>, vector<4x288xf32>,
    %c0_161 = arith.constant 0 : index
    %c0_162 = arith.constant 0 : index
    %113 = vector.load %arg9[%c0_161, %c0_162] : memref<72x288xf32, #tpu.memory_space<vmem>>, vector<72x288xf32>
    %cst_163 = arith.constant dense<0.000000e+00> : vector<4x288xf32>
    %114 = tpu.matmul %12, %113, %cst_163 {dimension_numbers = #tpu.dot_dimension_numbers<[1], [0], [0], [1], [0, 0, 1, 1], [], []>} : vector<4x72xf32>, vector<72x288xf32>, vector<4x288xf32> -> vector<4x288xf32>
    %115 = vector.broadcast %15 : vector<4x1xf32> to vector<4x288xf32>
    %116 = arith.addf %114, %115 : vector<4x288xf32>
    %cst_164 = arith.constant 0.000000e+00 : f32
    %117 = vector.broadcast %cst_164 : f32 to vector<4x288xf32>
    %118 = arith.maximumf %116, %117 : vector<4x288xf32>
    %c0_165 = arith.constant 0 : index
    %c0_166 = arith.constant 0 : index
    %c0_167 = arith.constant 0 : index
    %119 = vector.load %arg6[%c0_165, %c0_166, %c0_167] : memref<1x4x288xf32, #tpu.memory_space<vmem>>, vector<1x4x288xf32>
    %120 = vector.shape_cast %119 : vector<1x4x288xf32> to vector<4x288xf32>
    %121 = vector.shape_cast %118 : vector<4x288xf32> to vector<1x4x288xf32>
    tpu.vector_store %arg6[%c0_165, %c0_166, %c0_167], %121 {strides = array<i32>} : memref<1x4x288xf32, #tpu.memory_space<vmem>>, vector<1x4x288xf32>,
    return
  }
  func.func @transform_0(%arg0: i32) -> (i32, i32, i32) {
    %c0_i32 = arith.constant 0 : i32
    %c0_i32_0 = arith.constant 0 : i32
    %c0_i32_1 = arith.constant 0 : i32
    return %arg0, %c0_i32, %c0_i32_0 : i32, i32, i32
  }
  func.func @transform_1(%arg0: i32) -> (i32, i32, i32) {
    %c0_i32 = arith.constant 0 : i32
    %c0_i32_0 = arith.constant 0 : i32
    %c0_i32_1 = arith.constant 0 : i32
    return %arg0, %c0_i32, %c0_i32_0 : i32, i32, i32
  }
  func.func @transform_2(%arg0: i32) -> (i32, i32) {
    %c0_i32 = arith.constant 0 : i32
    %c0_i32_0 = arith.constant 0 : i32
    %c0_i32_1 = arith.constant 0 : i32
    return %c0_i32, %c0_i32_0 : i32, i32
  }
  func.func @transform_3(%arg0: i32) -> (i32, i32) {
    %c0_i32 = arith.constant 0 : i32
    %c0_i32_0 = arith.constant 0 : i32
    %c0_i32_1 = arith.constant 0 : i32
    return %c0_i32, %c0_i32_0 : i32, i32
  }
  func.func @transform_4(%arg0: i32) -> (i32, i32) {
    %c0_i32 = arith.constant 0 : i32
    %c0_i32_0 = arith.constant 0 : i32
    %c0_i32_1 = arith.constant 0 : i32
    return %c0_i32, %c0_i32_0 : i32, i32
  }
  func.func @transform_5(%arg0: i32) -> (i32, i32, i32) {
    %c0_i32 = arith.constant 0 : i32
    %c0_i32_0 = arith.constant 0 : i32
    %c0_i32_1 = arith.constant 0 : i32
    return %arg0, %c0_i32, %c0_i32_0 : i32, i32, i32
  }
}

</mosaic_0001>

<bundles_post_ra>
// kernel: expanding_block_forward.1
= control target key start
LH: loop header
LB: loop body
LE: loop exit
PB: predicated region body
PF: predicated region fallthrough
CT: control target
= control target key end

     0   :  { %s2145_s18 = smov 0   ;;  %s2630_s0 = inlined_call_operand.vmem [shape: f32[2,8,64], index: 0, kind: input, shape index: {}]   ;;  %s2631_s1 = inlined_call_operand.vmem [shape: f32[2,4,326], index: 1, kind: input, shape index: {}]   ;;  %s2632_s2 = inlined_call_operand.vmem [shape: f32[64,326], index: 2, kind: input, shape index: {}]   ;;  %s2633_s3 = inlined_call_operand.vmem [shape: f32[1,288], index: 3, kind: input, shape index: {}]   ;;  %s2634_s4 = inlined_call_operand.vmem [shape: f32[4,219], index: 4, kind: input, shape index: {}]   ;;  %s2635_s5 = inlined_call_operand.vmem [shape: f32[2,4,288], index: 5, kind: output, shape index: {}]  }
   0x1 LB: > { %s1793_s19 = sadd.s32 4294967295, %s2095_s18   ;;  %p1797_p0 = scmp.ge.s32.totalorder %s2095_s18, 1  ;;  %s2095_s18 = sphi %s2145_s18, %s15_s18  }
   0x2   : > { %p196_p1 = scmp.lt.s32.totalorder %s2095_s18, 3 }
   0x4   : > { %p197_p2 = pnand %p1797_p0, %p196_p1 }
   0x5   : > { %v244_v0 = vld [vmem:[%s2632_s2 + $0x8] sm:$0xff] (!%p197_p2)  ;;  %v247_v1 = vld [vmem:[%s2632_s2 + $0x20] sm:$0xff] (!%p197_p2)  ;;  %v245_v2 = vld [vmem:[%s2632_s2 + $0x10] sm:$0xff] (!%p197_p2)  ;;  %v2097_v3 = vmov (!%p197_p2), 0.0|0.0   ;;  %vm2636_vm0 = vmmov (!%p197_p2), 0   ;;  %v2099_v8 = vmov (!%p197_p2), 0.0  }
   0x6   : > { %200 = sbr.rel (%p197_p2) target bundleno = 1683 (0x693), region = 40  ;;  %1948 = vmatprep.subr.bf16.mxu1 (!%p197_p2), %v2097_v3  ;;  %v1932_v4 = vpack.c.bf16 (!%p197_p2), %v247_v1, %v244_v0  ;;  %v248_v5 = vld [vmem:[%s2632_s2 + $0x28] sm:$0xff] (!%p197_p2)  ;;  %v243_v6 = vld [vmem:[%s2632_s2] sm:$0xff] (!%p197_p2)  ;;  %v246_v7 = vld [vmem:[%s2632_s2 + $0x18] sm:$0xff] (!%p197_p2)  ;;  %1866 = vmatprep.mubr.msk.f32.mxu1 (!%p197_p2), %vm2636_vm0, %v2099_v8  ;;  %p228_p3 = scmp.lt.s32.totalorder (!%p197_p2), %s1793_s19, 1  ;;  %vm267_vm1 = vcmask (!%p197_p2), 523264  }
   0x7   : > { %v1949_v9 = vpack.c.bf16 (!%p197_p2), %v248_v5, %v245_v2  ;;  %v1934_v10 = vpack.c.bf16 (!%p197_p2), %v246_v7, %v243_v6  ;;  %v250_v11 = vld [vmem:[%s2632_s2 + $0x38] sm:$0xff] (!%p197_p2)  ;;  %v253_v12 = vld [vmem:[%s2632_s2 + $0x50] sm:$0xff] (!%p197_p2)  ;;  %v251_v13 = vld [vmem:[%s2632_s2 + $0x40] sm:$0xff] (!%p197_p2)  ;;  %335 = vmatprep.mubr.f32.mxu0 (!%p197_p2), %v2099_v8  ;;  %vm414_vm2 = vcmask (!%p197_p2), 572416   ;;  %s2100_s30 = smov (!%p197_p2), 127   ;;  %s2101_s6 = smov (!%p197_p2), 126  }
   0x8   : > { %1933 = vmatprep.subr.bf16.mxu0 (!%p197_p2), %v1932_v4  ;;  %v1936_v14 = vpack.c.bf16 (!%p197_p2), %v253_v12, %v250_v11  ;;  %v254_v15 = vld [vmem:[%s2632_s2 + $0x58] sm:$0xff] (!%p197_p2)  ;;  %v249_v16 = vld [vmem:[%s2632_s2 + $0x30] sm:$0xff] (!%p197_p2)  ;;  %v252_v17 = vld [vmem:[%s2632_s2 + $0x48] sm:$0xff] (!%p197_p2)  ;;  %vm429_vm3 = vcmask (!%p197_p2), 261120   ;;  %s2102_s7 = smov (!%p197_p2), 109   ;;  %s2103_s9 = smov (!%p197_p2), 92  }
   0x9   : > { %1950 = vmatpush3.bf16.msra.mxu1 (!%p197_p2), %v1949_v9  ;;  %1935 = vmatpush1.bf16.msra.mxu0 (!%p197_p2), %v1934_v10  ;;  %v1952_v18 = vpack.c.bf16 (!%p197_p2), %v254_v15, %v251_v13  ;;  %v1938_v19 = vpack.c.bf16 (!%p197_p2), %v252_v17, %v249_v16  ;;  %v256_v20 = vld [vmem:[%s2632_s2 + $0x68] sm:$0xff] (!%p197_p2)  ;;  %v259_v21 = vld [vmem:[%s2632_s2 + $0x80] sm:$0xff] (!%p197_p2)  ;;  %v257_v22 = vld [vmem:[%s2632_s2 + $0x70] sm:$0xff] (!%p197_p2)  ;;  %s2104_s10 = smov (!%p197_p2), 110   ;;  %s2105_s11 = smov (!%p197_p2), 108   ;;  %v2108_v44 = vmov (!%p197_p2), 88  }
   0xa   : > { %1951 = vmatprep.subr.bf16.mxu1 (!%p197_p2), %v2097_v3  ;;  %1937 = vmatprep.subr.bf16.mxu0 (!%p197_p2), %v1936_v14  ;;  %v1940_v23 = vpack.c.bf16 (!%p197_p2), %v259_v21, %v256_v20  ;;  %v260_v24 = vld [vmem:[%s2632_s2 + $0x88] sm:$0xff] (!%p197_p2)  ;;  %v255_v25 = vld [vmem:[%s2632_s2 + $0x60] sm:$0xff] (!%p197_p2)  ;;  %v258_v26 = vld [vmem:[%s2632_s2 + $0x78] sm:$0xff] (!%p197_p2)  ;;  %s2106_s12 = smov (!%p197_p2), 91   ;;  %s2107_s13 = smov (!%p197_p2), 90   ;;  %vm464_vm4 = vcmask (!%p197_p2), 1031168  }
   0xb   : > { %v262_v27 = vld [vmem:[%s2632_s2 + $0x98] sm:$0xff] (!%p197_p2)  ;;  %v265_v28 = vld [vmem:[%s2632_s2 + $0xb0] sm:$0xff] (!%p197_p2)  ;;  %v263_v29 = vld [vmem:[%s2632_s2 + $0xa0] sm:$0xff] (!%p197_p2)  ;;  %v1955_v32 = vpack.c.bf16 (!%p197_p2), %v260_v24, %v257_v22  ;;  %v1942_v33 = vpack.c.bf16 (!%p197_p2), %v258_v26, %v255_v25  ;;  %2071 = vset.pattern.permute.xlu0 (!%p197_p2), %v2108_v44  ;;  %vm485_vm5 = vcmask (!%p197_p2), 900096   ;;  %vm506_vm6 = vcmask (!%p197_p2), 891904   ;;  %s2110_s22 = smov (!%p197_p2), 19  }
   0xc   : > { %v266_v30 = vld [vmem:[%s2632_s2 + $0xb8] sm:$0xff] (!%p197_p2)  ;;  %v261_v31 = vld [vmem:[%s2632_s2 + $0x90] sm:$0xff] (!%p197_p2)  ;;  %v264_v34 = vld [vmem:[%s2632_s2 + $0xa8] sm:$0xff] (!%p197_p2)  ;;  %v1944_v35 = vpack.c.bf16 (!%p197_p2), %v265_v28, %v262_v27  ;;  %vm527_vm7 = vcmask (!%p197_p2), 883712   ;;  %vm844_vm8 = vcmask (!%p197_p2), 261124   ;;  %vm443_vm9 = vcmask (!%p197_p2), 1039360  }
   0xd   : > { %s2641_s19 = smov (!%p228_p3, %s1793_s19), 1  ;;  %1953 = vmatpush3.bf16.msra.mxu1 %v1952_v18  ;;  %1939 = vmatpush1.bf16.msra.mxu0 %v1938_v19  ;;  %v1958_v36 = vpack.c.bf16 %v266_v30, %v263_v29  ;;  %v1946_v37 = vpack.c.bf16 %v264_v34, %v261_v31  ;;  %v2300_v45 = vld [vmem:[%s2634_s4 + $0x4] sm:$0xf]  ;;  %vm548_vm10 = vcmask 752640   ;;  %vm569_vm11 = vcmask 744448   ;;  %s2114_s28 = smov 112  }
   0xe   : > { %s2044_s8 = smul.u32 12, %s2641_s19  ;;  %1954 = vmatprep.subr.bf16.mxu1 %v2097_v3  ;;  %1941 = vmatprep.subr.bf16.mxu0 %v1940_v23  ;;  %s1798_s26 = sshll.u32 %s2641_s19, 3  ;;  %vm590_vm12 = vcmask 736256   ;;  %vm641_vm13 = vcmask 588800   ;;  %vm832_vm14 = vcmask 257024   ;;  %vm416_vm15 = vcmask 150528  }
   0xf   : > { %s231_s29 = scalar_lea.vmem %s2630_s0, %s1798_s26  ;;  %417 = vst.msk [vmem:[#allocation3] sm:$0xf] %vm416_vm15, %v2099_v8  ;;  %vm814_vm15 = vcmask 154624   ;;  %s2112_s26 = smov 56  }
  0x10   : > { %s2235_s23 = scalar_lea.vmem %s2631_s1, %s2044_s8  ;;  %v242_v38 = vld [vmem:[%s231_s29] sm:$0xff] }
  0x11   : > { %1956 = vmatpush3.bf16.msra.mxu1 %v1955_v32  ;;  %1943 = vmatpush1.bf16.msra.mxu0 %v1942_v33  ;;  %v2315_v1 = vld [vmem:[%s2235_s23] sm:$0xff]  ;;  %v2075_v4 = vld [vmem:[%s2235_s23 + $0x8] ss:$0 sps:$4 sm:$0xff]  }
  0x12   : > { %1957 = vmatprep.subr.bf16.mxu1 %v2097_v3  ;;  %1945 = vmatprep.subr.bf16.mxu0 %v1944_v35  ;;  %v2321_v6 = vcombine.low %v2315_v1, %v2315_v1 }
  0x15   : > { %1959 = vmatpush3.bf16.msra.mxu1 %v1958_v36  ;;  %1947 = vmatpush1.bf16.msra.mxu0 %v1946_v37 }
  0x16   : > { %1976 = vmatprep.subr.bf16.mxu1 %v2097_v3 }
  0x18   : > { %1867 = vmatmul.mubr.msk.f32.vlgmr.msra.gmra.mrb[0].mxu1 %vm267_vm1, %v242_v38  ;;  %1801 = vmatmul.mubr.msk.f32.vlgmr.msra.gmra.mrb[0].mxu0 %vm267_vm1, %v242_v38  ;;  %vm418_vm1 = vcmask 568728  }
  0x19   : > { %1887 = vmatprep.mubr.msk.f32.mxu1 %vm2636_vm0, %v2099_v8  ;;  %709 = vmatprep.mubr.f32.mxu0 %v2099_v8  ;;  %419 = vst.msk [vmem:[#allocation3 + $0x8] sm:$0xf] %vm418_vm1, %v2099_v8 }
  0xeb   : > { %v408_v39 = vpop.f32.mrb[0].mxu1  ;;  %v2250_v40 = vpop.f32.mrb[0].mxu0 }
  0xec   : > { %415 = vst.msk [vmem:[#allocation2 + $0x10] sm:$0xff] %vm414_vm2, %v408_v39  ;;  %427 = vst [vmem:[#allocation4] sm:$0xff] %v2250_v40  ;;  %v1868_v41 = vpop.f32.mrb[1].mxu1  ;;  %v2253_v42 = vpop.f32.mrb[1].mxu0  ;;  %437 = vrot.lane.b32.xlu1 %v2250_v40, %s2100_s30  ;;  %vm819_vm2 = vcmask 1043608  }
  0xed   : > { %428 = vst [vmem:[#allocation4 + $0x8] sm:$0xff] %v2253_v42 }
  0xf0   : > { %458 = vrot.lane.b32.xlu1 %v2250_v40, %s2101_s6 }
  0xf3   : > { %v426_v43 = vld [vmem:[#allocation2 + $0x10] sm:$0xff] }
  0xf4   : > { %441 = vrot.lane.b32.xlu0 %v426_v43, %s2100_s30  ;;  %500 = vrot.lane.b32.xlu1 %v2250_v40, %s2102_s7  ;;  %430 = vst.msk [vmem:[#allocation4 + $0x10] sm:$0xff] %vm429_vm3, %v426_v43 }
  0xf8   : > { %462 = vrot.lane.b32.xlu0 %v426_v43, %s2101_s6  ;;  %542 = vrot.lane.b32.xlu1 %v2250_v40, %s2103_s9 }
  0xfb   : > { %v601_v53 = vld [vmem:[#allocation4 + $0x10] sm:$0xff] }
  0xfc   : > { %483 = vrot.lane.b32.xlu0 %v426_v43, %s2104_s10  ;;  %460 = vrot.lane.b32.xlu1 %v2253_v42, %s2101_s6 }
 0x100   : > { %504 = vrot.lane.b32.xlu0 %v426_v43, %s2102_s7  ;;  %481 = vrot.lane.b32.xlu1 %v2253_v42, %s2104_s10 }
 0x104   : > { %525 = vrot.lane.b32.xlu0 %v426_v43, %s2105_s11  ;;  %502 = vrot.lane.b32.xlu1 %v2253_v42, %s2102_s7 }
 0x108   : > { %479 = vrot.lane.b32.xlu0 %v2250_v40, %s2104_s10  ;;  %523 = vrot.lane.b32.xlu1 %v2253_v42, %s2105_s11 }
 0x10c   : > { %439 = vrot.lane.b32.xlu0 %v2253_v42, %s2100_s30  ;;  %544 = vrot.lane.b32.xlu1 %v2253_v42, %s2103_s9 }
 0x110   : > { %521 = vrot.lane.b32.xlu0 %v2250_v40, %s2105_s11  ;;  %565 = vrot.lane.b32.xlu1 %v2253_v42, %s2106_s12 }
 0x114   : > { %546 = vrot.lane.b32.xlu0 %v426_v43, %s2103_s9  ;;  %586 = vrot.lane.b32.xlu1 %v2253_v42, %s2107_s13 }
 0x118   : > { %567 = vrot.lane.b32.xlu0 %v426_v43, %s2106_s12  ;;  %584 = vrot.lane.b32.xlu1 %v2250_v40, %s2107_s13 }
 0x11c   : > { %563 = vrot.lane.b32.xlu0 %v2250_v40, %s2106_s12 }
 0x120   : > { %588 = vrot.lane.b32.xlu0 %v426_v43, %s2107_s13 }
 0x124   : > { %628 = vperm.xlu0 %2071, %v2300_v45  }
 0x15e   : > { %v438_v46 = vpop.permute.xlu1 %437 }
 0x162   : > { %v459_v47 = vpop.permute.xlu1 %458 }
 0x166   : > { %v442_v48 = vpop.permute.xlu0 %441  ;;  %v501_v49 = vpop.permute.xlu1 %500 }
 0x167   : > { %451 = vst.msk [vmem:[#allocation4 + $0x28] sm:$0xff] %vm429_vm3, %v442_v48 }
 0x16a   : > { %v463_v50 = vpop.permute.xlu0 %462  ;;  %v543_v51 = vpop.permute.xlu1 %542 }
 0x16b   : > { %472 = vst.msk [vmem:[#allocation4 + $0x40] sm:$0xff] %vm429_vm3, %v463_v50 }
 0x16e   : > { %v484_v52 = vpop.permute.xlu0 %483  ;;  %v604_v54 = vld [vmem:[#allocation4 + $0x28] sm:$0xff]  ;;  %v461_v55 = vpop.permute.xlu1 %460 }
 0x16f   : > { %493 = vst.msk [vmem:[#allocation4 + $0x58] sm:$0xff] %vm429_vm3, %v484_v52  ;;  %v1977_v56 = vpack.c.bf16 %v604_v54, %v601_v53  ;;  %v2307_v57 = vsel %vm464_vm4, %v459_v47, %v461_v55  ;;  %v466_v58 = vsel %vm464_vm4, %v461_v55, %v463_v50  ;;  %v2359_v50 = vcombine.high %v2315_v1, %v2315_v1 }
 0x170   : > { %470 = vst [vmem:[#allocation4 + $0x30] sm:$0xff] %v2307_v57  ;;  %471 = vst [vmem:[#allocation4 + $0x38] sm:$0xff] %v466_v58  ;;  %v2109_v53 = vmov 839922192   ;;  %v634_v55 = vlaneseq }
 0x171   : > { %1978 = vmatpush3.bf16.msra.mxu1 %v1977_v56  ;;  %873 = vrot.lane.b32.xlu1 %v2359_v50, %s2100_s30  ;;  %v632_v54 = vunpack.c.l.s4 %v2109_v53 }
 0x172   : > { %v505_v59 = vpop.permute.xlu0 %504  ;;  %1979 = vmatprep.subr.bf16.mxu1 %v2097_v3  ;;  %v482_v60 = vpop.permute.xlu1 %481  ;;  %v607_v63 = vld [vmem:[#allocation4 + $0x40] sm:$0xff] }
 0x173   : > { %514 = vst.msk [vmem:[#allocation4 + $0x70] sm:$0xff] %vm429_vm3, %v505_v59  ;;  %v487_v61 = vsel %vm485_vm5, %v482_v60, %v484_v52  ;;  %v2077_v52 = vld [vmem:[%s2235_s23 + $0x8] ss:$0 sps:$4 sm:$0xff]   ;;  %v633_v56 = vunpack.c.0.s8 %v632_v54 }
 0x174   : > { %492 = vst [vmem:[#allocation4 + $0x50] sm:$0xff] %v487_v61  ;;  %v1964_v26 = vpack.c.bf16 %v487_v61, %v466_v58 }
 0x176   : > { %v526_v62 = vpop.permute.xlu0 %525  ;;  %v610_v0 = vld [vmem:[#allocation4 + $0x58] sm:$0xff]  ;;  %v503_v2 = vpop.permute.xlu1 %502 }
 0x177   : > { %535 = vst.msk [vmem:[#allocation4 + $0x88] sm:$0xff] %vm429_vm3, %v526_v62  ;;  %v1980_v5 = vpack.c.bf16 %v610_v0, %v607_v63  ;;  %v507_v7 = vsel %vm506_vm6, %v501_v49, %v503_v2  ;;  %v508_v9 = vsel %vm506_vm6, %v503_v2, %v505_v59  ;;  %v420_v2 = vld [vmem:[%s2633_s3] sm:$0x7] }
 0x178   : > { %512 = vst [vmem:[#allocation4 + $0x60] sm:$0xff] %v507_v7  ;;  %513 = vst [vmem:[#allocation4 + $0x68] sm:$0xff] %v508_v9 }
 0x179   : > { %1981 = vmatpush3.bf16.msra.mxu1 %v1980_v5  ;;  %842 = vst [vmem:[#allocation4 + $0x60] sm:$0xf0] %v2321_v6  ;;  %843 = vst [vmem:[#allocation4 + $0x68] sm:$0xf0] %v2315_v1 }
 0x17a   : > { %v613_v10 = vld [vmem:[#allocation4 + $0x70] sm:$0xff]  ;;  %v480_v11 = vpop.permute.xlu0 %479  ;;  %1982 = vmatprep.subr.bf16.mxu1 %v2097_v3  ;;  %v524_v12 = vpop.permute.xlu1 %523 }
 0x17b   : > { %845 = vst.msk [vmem:[#allocation4 + $0x70] sm:$0xf0] %vm844_vm8, %v2075_v4  ;;  %v486_v13 = vsel %vm485_vm5, %v480_v11, %v482_v60  ;;  %v529_v14 = vsel %vm527_vm7, %v524_v12, %v526_v62 }
 0x17c   : > { %491 = vst [vmem:[#allocation4 + $0x48] sm:$0xff] %v486_v13  ;;  %534 = vst [vmem:[#allocation4 + $0x80] sm:$0xff] %v529_v14  ;;  %v1966_v28 = vpack.c.bf16 %v486_v13, %v2307_v57  ;;  %v1968_v31 = vpack.c.bf16 %v529_v14, %v508_v9  ;;  %v635_v57 = vshrl.u32 %v634_v55, 7 }
 0x17e   : > { %v440_v15 = vpop.permute.xlu0 %439  ;;  %v616_v16 = vld [vmem:[#allocation4 + $0x88] sm:$0xff]  ;;  %v545_v17 = vpop.permute.xlu1 %544  ;;  %v2379_v59 = vsub.s32 %v633_v56, %v635_v57  ;;  %v789_v0 = vsub.s32 0, %v635_v57  ;;  %v793_v4 = vsub.s32 1, %v635_v57  ;;  %v797_v9 = vsub.s32 2, %v635_v57 }
 0x17f   : > { %v444_v18 = vsel %vm443_vm9, %v438_v46, %v440_v15  ;;  %v445_v19 = vsel %vm443_vm9, %v440_v15, %v442_v48  ;;  %v1983_v20 = vpack.c.bf16 %v616_v16, %v613_v10  ;;  %v549_v21 = vsel %vm548_vm10, %v543_v51, %v545_v17  ;;  %v421_v48 = vld [vmem:[%s2634_s4] sm:$0xf]  ;;  %v867_v51 = vld [vmem:[%s2235_s23 + $0x8] sm:$0xf] }
 0x180   : > { %449 = vst [vmem:[#allocation4 + $0x18] sm:$0xff] %v444_v18  ;;  %450 = vst [vmem:[#allocation4 + $0x20] sm:$0xff] %v445_v19  ;;  %v1960_v22 = vpack.c.bf16 %v445_v19, %v2253_v42  ;;  %v1962_v23 = vpack.c.bf16 %v444_v18, %v2250_v40  ;;  %875 = vrot.lane.b32.xlu0 %v867_v51, %s2100_s30  ;;  %v2394_v11 = vrot.slane %v420_v2, %v793_v4 }
 0x181   : > { %554 = vst [vmem:[#allocation4 + $0x90] sm:$0xff] %v549_v21  ;;  %1984 = vmatpush3.bf16.msra.mxu1 %v1983_v20  ;;  %v2397_v16 = vrot.slane %v420_v2, %v797_v9 }
 0x182   : > { %v522_v24 = vpop.permute.xlu0 %521  ;;  %1961 = vmatprep.subr.bf16.mxu0 %v1960_v22  ;;  %v566_v25 = vpop.permute.xlu1 %565  ;;  %1985 = vmatprep.subr.bf16.mxu1 %v2097_v3 }
 0x183   : > { %v528_v27 = vsel %vm527_vm7, %v522_v24, %v524_v12  ;;  %1963 = vmatpush1.bf16.msra.mxu0 %v1962_v23  ;;  %v945_v24 = vld [vmem:[%s2235_s23 + $0x8] sm:$0xf] }
 0x184   : > { %533 = vst [vmem:[#allocation4 + $0x78] sm:$0xff] %v528_v27  ;;  %1965 = vmatprep.subr.bf16.mxu0 %v1964_v26  ;;  %v1970_v33 = vpack.c.bf16 %v528_v27, %v507_v7  ;;  %914 = vrot.lane.b32.xlu0 %v2077_v52, %s2101_s6  ;;  %v2392_v7 = vrot.slane %v420_v2, %v789_v0  ;;  %v1023_v26 = vld [vmem:[%s2235_s23 + $0x8] sm:$0xf] }
 0x185   : > { %v2079_v27 = vld [vmem:[%s2235_s23 + $0x8] ss:$0 sps:$4 sm:$0xff]  }
 0x186   : > { %v547_v29 = vpop.permute.xlu0 %546  ;;  %v587_v30 = vpop.permute.xlu1 %586 }
 0x187   : > { %556 = vst.msk [vmem:[#allocation4 + $0xa0] sm:$0xff] %vm429_vm3, %v547_v29  ;;  %v550_v32 = vsel %vm548_vm10, %v545_v17, %v547_v29  ;;  %1967 = vmatpush1.bf16.msra.mxu0 %v1966_v28 }
 0x188   : > { %555 = vst [vmem:[#allocation4 + $0x98] sm:$0xff] %v550_v32  ;;  %1969 = vmatprep.subr.bf16.mxu0 %v1968_v31  ;;  %910 = vrot.lane.b32.xlu0 %v2321_v6, %s2101_s6 }
 0x18a   : > { %v568_v34 = vpop.permute.xlu0 %567  ;;  %v585_v35 = vpop.permute.xlu1 %584 }
 0x18b   : > { %577 = vst.msk [vmem:[#allocation4 + $0xb8] sm:$0xff] %vm429_vm3, %v568_v34  ;;  %v571_v36 = vsel %vm569_vm11, %v566_v25, %v568_v34  ;;  %v591_v37 = vsel %vm590_vm12, %v585_v35, %v587_v30  ;;  %1971 = vmatpush1.bf16.msra.mxu0 %v1970_v33 }
 0x18c   : > { %576 = vst [vmem:[#allocation4 + $0xb0] sm:$0xff] %v571_v36  ;;  %596 = vst [vmem:[#allocation4 + $0xc0] sm:$0xff] %v591_v37  ;;  %v1972_v38 = vpack.c.bf16 %v571_v36, %v550_v32  ;;  %951 = vrot.lane.b32.xlu0 %v2359_v50, %s2104_s10 }
 0x18e   : > { %v564_v39 = vpop.permute.xlu0 %563  ;;  %1973 = vmatprep.subr.bf16.mxu0 %v1972_v38  ;;  %v619_v43 = vld [vmem:[#allocation4 + $0xa0] sm:$0xff] }
 0x18f   : > { %v570_v40 = vsel %vm569_vm11, %v564_v39, %v566_v25  ;;  %v2078_v25 = vld [vmem:[%s2235_s23 + $0x8] ss:$0 sps:$4 sm:$0xff]  }
 0x190   : > { %575 = vst [vmem:[#allocation4 + $0xa8] sm:$0xff] %v570_v40  ;;  %v1974_v41 = vpack.c.bf16 %v570_v40, %v549_v21  ;;  %990 = vrot.lane.b32.xlu0 %v2315_v1, %s2102_s7 }
 0x192   : > { %v589_v42 = vpop.permute.xlu0 %588  ;;  %v622_v44 = vld [vmem:[#allocation4 + $0xb8] sm:$0xff]  ;;  %1975 = vmatpush1.bf16.msra.mxu0 %v1974_v41 }
 0x193   : > { %v592_v46 = vsel %vm590_vm12, %v587_v30, %v589_v42  ;;  %598 = vst.msk [vmem:[#allocation4 + $0xd0] sm:$0xff] %vm429_vm3, %v589_v42  ;;  %v1986_v47 = vpack.c.bf16 %v622_v44, %v619_v43  ;;  %vm820_vm3 = vcmask 1047556  }
 0x194   : > { %597 = vst [vmem:[#allocation4 + $0xc8] sm:$0xff] %v592_v46  ;;  %661 = vmatprep.subr.mxu0 %v592_v46  ;;  %1029 = vrot.lane.b32.xlu0 %v2359_v50, %s2105_s11  ;;  %vm2425_vm1 = vmor %vm820_vm3, %vm819_vm2  ;;  %vm2639_vm2 = vmmov 0  }
 0x195   : > { %1987 = vmatpush3.bf16.msra.mxu1 %v1986_v47 }
 0x196   : > { %1885 = vmatprep.subr.mxu1 %v2099_v8  ;;  %662 = vmatpush1.msra.mxu0 %v591_v37 }
 0x197   : > { %1803 = vmatmul.mubr.msk.f32.vlgmr.msra.gmra.mrb[2].mxu0 %vm641_vm13, %v421_v48 }
 0x198   : > { %1273 = vmatprep.mubr.f32.mxu0 %v2099_v8  ;;  %1068 = vrot.lane.b32.xlu0 %v2315_v1, %s2103_s9 }
 0x19a   : > { %v625_v49 = vld [vmem:[#allocation4 + $0xd0] sm:$0xff] }
 0x19b   : > { %1886 = vmatpush3.msra.mxu1 %v625_v49 }
 0x19c   : > { %1888 = vmatmul.mubr.msk.f32.vlgmr.msra.gmra.mrb[2].mxu1 %vm641_vm13, %v421_v48  ;;  %2004 = vmatprep.subr.bf16.mxu1 %v2097_v3 }
 0x19d   : > { %1908 = vmatprep.mubr.msk.f32.mxu1 %vm2636_vm0, %v2099_v8  ;;  %949 = vrot.lane.b32.xlu0 %v2315_v1, %s2104_s10  ;;  %vm823_vm0 = vcmask 412672  }
 0x1a3   : > { %v629_v58 = vpop.permute.xlu0 %628 }
 0x1a4   : > { %v637_v63 = vrot.slane %v629_v58, %v2379_v59 }
 0x1a6   : > { %v639_v5 = vcombine.high %v637_v63, %v637_v63 }
 0x1e3   : > { %v2381_v60 = vpop.permute.xlu1 %873 }
 0x1f2   : > { %v876_v61 = vpop.permute.xlu0 %875 }
 0x1f3   : > { %v878_v62 = vsel %vm443_vm9, %v2381_v60, %v876_v61  ;;  %884 = vst.msk [vmem:[#allocation4 + $0x88] sm:$0xf] %vm832_vm14, %v876_v61 }
 0x1f4   : > { %883 = vst [vmem:[#allocation4 + $0x80] sm:$0xf] %v878_v62 }
 0x1f6   : > { %v915_v18 = vpop.permute.xlu0 %914 }
 0x1f7   : > { %923 = vst.msk [vmem:[#allocation4 + $0x88] sm:$0xf0] %vm844_vm8, %v915_v18 }
 0x1fa   : > { %v911_v28 = vpop.permute.xlu0 %910 }
 0x1fe   : > { %v952_v29 = vpop.permute.xlu0 %951 }
 0x202   : > { %v2418_v30 = vpop.permute.xlu0 %990 }
 0x206   : > { %v2420_v31 = vpop.permute.xlu0 %1029 }
 0x20a   : > { %v2422_v32 = vpop.permute.xlu0 %1068 }
 0x20f   : > { %v950_v33 = vpop.permute.xlu0 %949 }
 0x210   : > { %v955_v34 = vsel %vm485_vm5, %v950_v33, %v952_v29 }
 0x211   : > { %960 = vst [vmem:[#allocation4 + $0x90] sm:$0xf] %v955_v34 }
 0x26a   : > { %v711_v10 = vpop.f32.mrb[2].mxu0 }
 0x26b   : > { %v712_v12 = vadd.f32 %v711_v10, %v637_v63  ;;  %v713_v13 = vpop.f32.mrb[3].mxu0 }
 0x26c   : > { %v714_v14 = vadd.f32 %v713_v13, %v639_v5  ;;  %v1101_v13 = vld [vmem:[%s2235_s23 + $0x8] sm:$0xf] }
 0x26d   : > { %v802_v15 = vmul.f32 %v2392_v7, %v712_v12 }
 0x26e   : > { %v803_v17 = vmul.f32 %v2394_v11, %v714_v14  ;;  %v2085_v14 = vld [vmem:[%s2235_s23 + $0x8] ss:$0 sps:$4 sm:$0xff]  }
 0x26f   : > { %v782_v19 = vpop.f32.mrb[2].mxu1 }
 0x270   : > { %v783_v20 = vadd.f32 %v782_v19, %v637_v63  ;;  %v1889_v21 = vpop.f32.mrb[3].mxu1  ;;  %v808_v22 = vcombine.low %v802_v15, %v803_v17  ;;  %v422_v15 = vld [vmem:[%s2634_s4] sm:$0xff]  ;;  %v2111_v17 = vmov 89  }
 0x271   : > { %2072 = vset.pattern.permute.xlu0 %v2111_v17 }
 0x272   : > { %v804_v23 = vmul.f32 %v2397_v16, %v783_v20 }
 0x274   : > { %811 = vrot.lane.b32.xlu1 %v804_v23, %s2110_s22 }
 0x278   : > { %809 = vrot.lane.b32.xlu1 %v808_v22, %s2110_s22 }
 0x27c   : > { %912 = vrot.lane.b32.xlu1 %v2315_v1, %s2101_s6 }
 0x280   : > { %871 = vrot.lane.b32.xlu1 %v2315_v1, %s2100_s30 }
 0x284   : > { %953 = vrot.lane.b32.xlu1 %v945_v24, %s2104_s10 }
 0x288   : > { %992 = vrot.lane.b32.xlu1 %v2078_v25, %s2102_s7 }
 0x28c   : > { %1031 = vrot.lane.b32.xlu1 %v1023_v26, %s2105_s11 }
 0x290   : > { %1070 = vrot.lane.b32.xlu1 %v2079_v27, %s2103_s9 }
 0x294   : > { %988 = vrot.lane.b32.xlu1 %v2321_v6, %s2102_s7 }
 0x2e6   : > { %v812_v35 = vpop.permute.xlu1 %811 }
 0x2ea   : > { %v810_v36 = vpop.permute.xlu1 %809 }
 0x2eb   : > { %v813_v38 = vrot.slane %v810_v36, 4 }
 0x2ed   : > { %v815_v39 = vsel %vm814_vm15, %v813_v38, %v810_v36  ;;  %v816_v40 = vsel %vm814_vm15, %v813_v38, %v812_v35 }
 0x2ee   : > { %822 = vst.msk [vmem:[#allocation3] sm:$0xff] %vm2425_vm1, %v815_v39  ;;  %v913_v41 = vpop.permute.xlu1 %912 }
 0x2ef   : > { %824 = vst.msk [vmem:[#allocation3 + $0x8] sm:$0xf] %vm823_vm0, %v816_v40  ;;  %v917_v42 = vsel %vm464_vm4, %v913_v41, %v915_v18  ;;  %v916_v43 = vsel %vm464_vm4, %v911_v28, %v913_v41  ;;  %v1197_v18 = vcombine.high %v422_v15, %v422_v15 }
 0x2f0   : > { %922 = vst [vmem:[#allocation4 + $0x80] sm:$0xf0] %v917_v42  ;;  %921 = vst [vmem:[#allocation4 + $0x78] sm:$0xf0] %v916_v43 }
 0x2f2   : > { %v872_v44 = vpop.permute.xlu1 %871 }
 0x2f3   : > { %v877_v46 = vsel %vm443_vm9, %v872_v44, %v2381_v60 }
 0x2f4   : > { %882 = vst [vmem:[#allocation4 + $0x78] sm:$0xf] %v877_v46 }
 0x2f5   : > { %v825_v47 = vld [vmem:[#allocation3] sm:$0xff] }
 0x2f6   : > { %v826_v48 = vld [vmem:[#allocation3 + $0x8] sm:$0xf]  ;;  %v828_v51 = vcombine.high %v825_v47, %v825_v47  ;;  %830 = vst [vmem:[#allocation4] sm:$0xf] %v825_v47  ;;  %854 = vrot.lane.b32.xlu0 %v825_v47, %s2100_s30  ;;  %v954_v52 = vpop.permute.xlu1 %953  ;;  %v850_v4 = vcombine.low %v825_v47, %v825_v47 }
 0x2f7   : > { %v886_v49 = vld [vmem:[#allocation3 + $0x8] sm:$0xf]  ;;  %833 = vst.msk [vmem:[#allocation4 + $0x10] sm:$0xf] %vm832_vm14, %v826_v48  ;;  %v956_v53 = vsel %vm485_vm5, %v952_v29, %v954_v52  ;;  %962 = vst.msk [vmem:[#allocation4 + $0xa0] sm:$0xf] %vm832_vm14, %v954_v52 }
 0x2f8   : > { %894 = vrot.lane.b32.xlu1 %v886_v49, %s2101_s6  ;;  %831 = vst [vmem:[#allocation4 + $0x8] sm:$0xf] %v828_v51  ;;  %961 = vst [vmem:[#allocation4 + $0x98] sm:$0xf] %v956_v53  ;;  %v964_v56 = vld [vmem:[#allocation3 + $0x8] sm:$0xf] }
 0x2f9   : > { %v1042_v60 = vld [vmem:[#allocation3 + $0x8] sm:$0xf] }
 0x2fa   : > { %932 = vrot.lane.b32.xlu0 %v825_v47, %s2104_s10  ;;  %v993_v54 = vpop.permute.xlu1 %992  ;;  %v1120_v63 = vld [vmem:[#allocation3 + $0x8] sm:$0xf] }
 0x2fb   : > { %v995_v55 = vsel %vm506_vm6, %v2418_v30, %v993_v54  ;;  %1001 = vst.msk [vmem:[#allocation4 + $0xa0] sm:$0xf0] %vm844_vm8, %v993_v54  ;;  %v2081_v5 = vld [vmem:[#allocation3 + $0x8] ss:$0 sps:$4 sm:$0xff]  }
 0x2fc   : > { %890 = vrot.lane.b32.xlu1 %v825_v47, %s2101_s6  ;;  %1000 = vst [vmem:[#allocation4 + $0x98] sm:$0xf0] %v995_v55  ;;  %v2082_v9 = vld [vmem:[#allocation3 + $0x8] ss:$0 sps:$4 sm:$0xff]  }
 0x2fd   : > { %v2083_v10 = vld [vmem:[#allocation3 + $0x8] ss:$0 sps:$4 sm:$0xff]  }
 0x2fe   : > { %972 = vrot.lane.b32.xlu0 %v964_v56, %s2102_s7  ;;  %v1032_v57 = vpop.permute.xlu1 %1031  ;;  %v2084_v12 = vld [vmem:[#allocation3 + $0x8] ss:$0 sps:$4 sm:$0xff]  }
 0x2ff   : > { %v1034_v58 = vsel %vm527_vm7, %v2420_v31, %v1032_v57  ;;  %1040 = vst.msk [vmem:[#allocation4 + $0xb8] sm:$0xf] %vm832_vm14, %v1032_v57 }
 0x300   : > { %1010 = vrot.lane.b32.xlu1 %v825_v47, %s2105_s11  ;;  %1039 = vst [vmem:[#allocation4 + $0xb0] sm:$0xf] %v1034_v58 }
 0x302   : > { %1050 = vrot.lane.b32.xlu0 %v1042_v60, %s2103_s9  ;;  %v1071_v61 = vpop.permute.xlu1 %1070 }
 0x303   : > { %v1073_v62 = vsel %vm548_vm10, %v2422_v32, %v1071_v61  ;;  %1079 = vst.msk [vmem:[#allocation4 + $0xb8] sm:$0xf0] %vm844_vm8, %v1071_v61 }
 0x304   : > { %1088 = vrot.lane.b32.xlu1 %v825_v47, %s2106_s12  ;;  %1078 = vst [vmem:[#allocation4 + $0xb0] sm:$0xf0] %v1073_v62 }
 0x306   : > { %1128 = vrot.lane.b32.xlu0 %v1120_v63, %s2107_s13  ;;  %v989_v0 = vpop.permute.xlu1 %988 }
 0x307   : > { %v994_v2 = vsel %vm506_vm6, %v989_v0, %v2418_v30 }
 0x308   : > { %968 = vrot.lane.b32.xlu1 %v825_v47, %s2102_s7  ;;  %999 = vst [vmem:[#allocation4 + $0x90] sm:$0xf0] %v994_v2 }
 0x30a   : > { %892 = vrot.lane.b32.xlu0 %v828_v51, %s2101_s6 }
 0x30c   : > { %1046 = vrot.lane.b32.xlu1 %v825_v47, %s2103_s9 }
 0x30e   : > { %852 = vrot.lane.b32.xlu0 %v850_v4, %s2100_s30 }
 0x310   : > { %1124 = vrot.lane.b32.xlu1 %v825_v47, %s2107_s13 }
 0x312   : > { %930 = vrot.lane.b32.xlu0 %v850_v4, %s2104_s10 }
 0x314   : > { %856 = vrot.lane.b32.xlu1 %v2081_v5, %s2100_s30 }
 0x316   : > { %1012 = vrot.lane.b32.xlu0 %v2083_v10, %s2105_s11 }
 0x318   : > { %934 = vrot.lane.b32.xlu1 %v2082_v9, %s2104_s10 }
 0x31a   : > { %1090 = vrot.lane.b32.xlu0 %v2084_v12, %s2106_s12 }
 0x31c   : > { %970 = vrot.lane.b32.xlu1 %v828_v51, %s2102_s7 }
 0x31e   : > { %1008 = vrot.lane.b32.xlu0 %v850_v4, %s2105_s11 }
 0x320   : > { %1048 = vrot.lane.b32.xlu1 %v828_v51, %s2103_s9 }
 0x322   : > { %1086 = vrot.lane.b32.xlu0 %v850_v4, %s2106_s12 }
 0x324   : > { %1066 = vrot.lane.b32.xlu1 %v2321_v6, %s2103_s9 }
 0x326   : > { %1027 = vrot.lane.b32.xlu0 %v2315_v1, %s2105_s11 }
 0x328   : > { %1126 = vrot.lane.b32.xlu1 %v828_v51, %s2107_s13 }
 0x32a   : > { %1107 = vrot.lane.b32.xlu0 %v2359_v50, %s2106_s12 }
 0x32c   : > { %1109 = vrot.lane.b32.xlu1 %v1101_v13, %s2106_s12 }
 0x32e   : > { %1146 = vrot.lane.b32.xlu0 %v2315_v1, %s2107_s13 }
 0x330   : > { %1148 = vrot.lane.b32.xlu1 %v2085_v14, %s2107_s13 }
 0x332   : > { %1105 = vrot.lane.b32.xlu0 %v2315_v1, %s2106_s12 }
 0x334   : > { %1144 = vrot.lane.b32.xlu1 %v2321_v6, %s2107_s13 }
 0x336   : > { %1198 = vrot.lane.b32.xlu0 %v422_v15, %s2112_s26 }
 0x338   : > { %1200 = vrot.lane.b32.xlu1 %v1197_v18, %s2112_s26  ;;  %v1175_v18 = vld [vmem:[#allocation4 + $0x88] sm:$0xff] }
 0x33a   : > { %1186 = vperm.xlu0 %2072, %v2300_v45  }
 0x368   : > { %v855_v50 = vpop.permute.xlu0 %854 }
 0x36a   : > { %v895_v19 = vpop.permute.xlu1 %894 }
 0x36b   : > { %903 = vst.msk [vmem:[#allocation4 + $0x28] sm:$0xf] %vm832_vm14, %v895_v19 }
 0x36c   : > { %v933_v20 = vpop.permute.xlu0 %932 }
 0x36e   : > { %v891_v21 = vpop.permute.xlu1 %890 }
 0x370   : > { %v973_v22 = vpop.permute.xlu0 %972 }
 0x371   : > { %981 = vst.msk [vmem:[#allocation4 + $0x40] sm:$0xf] %vm832_vm14, %v973_v22 }
 0x372   : > { %v1011_v23 = vpop.permute.xlu1 %1010 }
 0x374   : > { %v1051_v6 = vpop.permute.xlu0 %1050 }
 0x375   : > { %1059 = vst.msk [vmem:[#allocation4 + $0x58] sm:$0xf] %vm832_vm14, %v1051_v6 }
 0x376   : > { %v2498_v24 = vpop.permute.xlu1 %1088 }
 0x378   : > { %v2501_v1 = vpop.permute.xlu0 %1128 }
 0x379   : > { %1137 = vst.msk [vmem:[#allocation4 + $0x70] sm:$0xf] %vm832_vm14, %v2501_v1 }
 0x37a   : > { %v969_v25 = vpop.permute.xlu1 %968 }
 0x37c   : > { %v893_v45 = vpop.permute.xlu0 %892 }
 0x37d   : > { %v896_v27 = vsel %vm464_vm4, %v891_v21, %v893_v45  ;;  %v897_v28 = vsel %vm464_vm4, %v893_v45, %v895_v19 }
 0x37e   : > { %v1047_v26 = vpop.permute.xlu1 %1046  ;;  %901 = vst [vmem:[#allocation4 + $0x18] sm:$0xf] %v896_v27  ;;  %902 = vst [vmem:[#allocation4 + $0x20] sm:$0xf] %v897_v28 }
 0x380   : > { %v853_v29 = vpop.permute.xlu0 %852  ;;  %v1172_v14 = vld [vmem:[#allocation4 + $0x70] sm:$0xff] }
 0x381   : > { %v858_v33 = vsel %vm443_vm9, %v853_v29, %v855_v50 }
 0x382   : > { %v2507_v30 = vpop.permute.xlu1 %1124  ;;  %863 = vst [vmem:[#allocation4] sm:$0xf0] %v858_v33  ;;  %v1174_v33 = vld [vmem:[#allocation4 + $0x80] sm:$0xff] }
 0x384   : > { %v931_v34 = vpop.permute.xlu0 %930 }
 0x385   : > { %v936_v36 = vsel %vm485_vm5, %v931_v34, %v933_v20  ;;  %v1173_v34 = vld [vmem:[#allocation4 + $0x78] sm:$0xff] }
 0x386   : > { %v857_v35 = vpop.permute.xlu1 %856  ;;  %941 = vst [vmem:[#allocation4 + $0x18] sm:$0xf0] %v936_v36 }
 0x387   : > { %v859_v38 = vsel %vm443_vm9, %v855_v50, %v857_v35  ;;  %865 = vst.msk [vmem:[#allocation4 + $0x10] sm:$0xf0] %vm844_vm8, %v857_v35  ;;  %v1177_v35 = vld [vmem:[#allocation4 + $0x98] sm:$0xff] }
 0x388   : > { %864 = vst [vmem:[#allocation4 + $0x8] sm:$0xf0] %v859_v38  ;;  %v1013_v39 = vpop.permute.xlu0 %1012 }
 0x389   : > { %v1015_v41 = vsel %vm527_vm7, %v1011_v23, %v1013_v39  ;;  %1021 = vst.msk [vmem:[#allocation4 + $0x40] sm:$0xf0] %vm844_vm8, %v1013_v39  ;;  %v1158_v63 = vld [vmem:[#allocation4] sm:$0xff] }
 0x38a   : > { %v935_v40 = vpop.permute.xlu1 %934  ;;  %1020 = vst [vmem:[#allocation4 + $0x38] sm:$0xf0] %v1015_v41 }
 0x38b   : > { %v937_v42 = vsel %vm485_vm5, %v933_v20, %v935_v40  ;;  %943 = vst.msk [vmem:[#allocation4 + $0x28] sm:$0xf0] %vm844_vm8, %v935_v40  ;;  %v2011_v20 = vpack.c.bf16 %v1175_v18, %v1172_v14  ;;  %v1180_v40 = vld [vmem:[#allocation4 + $0xb0] sm:$0xff] }
 0x38c   : > { %942 = vst [vmem:[#allocation4 + $0x20] sm:$0xf0] %v937_v42  ;;  %v1091_v43 = vpop.permute.xlu0 %1090 }
 0x38d   : > { %v1093_v46 = vsel %vm569_vm11, %v2498_v24, %v1091_v43  ;;  %1099 = vst.msk [vmem:[#allocation4 + $0x58] sm:$0xf0] %vm844_vm8, %v1091_v43  ;;  %v1161_v54 = vld [vmem:[#allocation4 + $0x18] sm:$0xff] }
 0x38e   : > { %v971_v44 = vpop.permute.xlu1 %970  ;;  %1098 = vst [vmem:[#allocation4 + $0x50] sm:$0xf0] %v1093_v46  ;;  %v1160_v52 = vld [vmem:[#allocation4 + $0x10] sm:$0xff]  ;;  %v1990_v0 = vpack.c.bf16 %v1161_v54, %v1158_v63  ;;  %v2000_v46 = vpack.c.bf16 %v1180_v40, %v1177_v35 }
 0x38f   : > { %v974_v47 = vsel %vm506_vm6, %v969_v25, %v971_v44  ;;  %v975_v48 = vsel %vm506_vm6, %v971_v44, %v973_v22  ;;  %v1159_v60 = vld [vmem:[#allocation4 + $0x8] sm:$0xff] }
 0x390   : > { %979 = vst [vmem:[#allocation4 + $0x30] sm:$0xf] %v974_v47  ;;  %980 = vst [vmem:[#allocation4 + $0x38] sm:$0xf] %v975_v48  ;;  %v1009_v49 = vpop.permute.xlu0 %1008  ;;  %v1166_v5 = vld [vmem:[#allocation4 + $0x40] sm:$0xff] }
 0x391   : > { %v1014_v55 = vsel %vm527_vm7, %v1009_v49, %v1011_v23 }
 0x392   : > { %v1049_v51 = vpop.permute.xlu1 %1048  ;;  %v1163_v53 = vld [vmem:[#allocation4 + $0x28] sm:$0xff]  ;;  %1019 = vst [vmem:[#allocation4 + $0x30] sm:$0xf0] %v1014_v55 }
 0x393   : > { %v1052_v56 = vsel %vm548_vm10, %v1047_v26, %v1049_v51  ;;  %v1053_v57 = vsel %vm548_vm10, %v1049_v51, %v1051_v6  ;;  %v2005_v58 = vpack.c.bf16 %v1163_v53, %v1160_v52  ;;  %v1162_v61 = vld [vmem:[#allocation4 + $0x20] sm:$0xff]  ;;  %v1176_v51 = vld [vmem:[#allocation4 + $0x90] sm:$0xff] }
 0x394   : > { %1057 = vst [vmem:[#allocation4 + $0x48] sm:$0xf] %v1052_v56  ;;  %1058 = vst [vmem:[#allocation4 + $0x50] sm:$0xf] %v1053_v57  ;;  %v1988_v62 = vpack.c.bf16 %v1162_v61, %v1159_v60  ;;  %v1087_v2 = vpop.permute.xlu0 %1086  ;;  %v1169_v9 = vld [vmem:[#allocation4 + $0x58] sm:$0xff]  ;;  %v1178_v6 = vld [vmem:[#allocation4 + $0xa0] sm:$0xff] }
 0x395   : > { %2006 = vmatpush3.bf16.msra.mxu1 %v2005_v58  ;;  %v1092_v10 = vsel %vm569_vm11, %v1087_v2, %v2498_v24  ;;  %v2008_v13 = vpack.c.bf16 %v1169_v9, %v1166_v5  ;;  %v1181_v24 = vld [vmem:[#allocation4 + $0xb8] sm:$0xff] }
 0x396   : > { %1989 = vmatprep.subr.bf16.mxu0 %v1988_v62  ;;  %v1067_v4 = vpop.permute.xlu1 %1066  ;;  %2007 = vmatprep.subr.bf16.mxu1 %v2097_v3  ;;  %1097 = vst [vmem:[#allocation4 + $0x48] sm:$0xf0] %v1092_v10 }
 0x397   : > { %v1072_v12 = vsel %vm548_vm10, %v1067_v4, %v2422_v32  ;;  %1991 = vmatpush1.bf16.msra.mxu0 %v1990_v0  ;;  %v1165_v21 = vld [vmem:[#allocation4 + $0x38] sm:$0xff] }
 0x398   : > { %1077 = vst [vmem:[#allocation4 + $0xa8] sm:$0xf0] %v1072_v12  ;;  %v1028_v15 = vpop.permute.xlu0 %1027 }
 0x399   : > { %2009 = vmatpush3.bf16.msra.mxu1 %v2008_v13  ;;  %v1033_v50 = vsel %vm527_vm7, %v1028_v15, %v2420_v31  ;;  %v1164_v26 = vld [vmem:[#allocation4 + $0x30] sm:$0xff] }
 0x39a   : > { %v1127_v17 = vpop.permute.xlu1 %1126  ;;  %2010 = vmatprep.subr.bf16.mxu1 %v2097_v3  ;;  %1038 = vst [vmem:[#allocation4 + $0xa8] sm:$0xf] %v1033_v50 }
 0x39b   : > { %v1130_v19 = vsel %vm590_vm12, %v2507_v30, %v1127_v17  ;;  %v1131_v32 = vsel %vm590_vm12, %v1127_v17, %v2501_v1  ;;  %v1168_v22 = vld [vmem:[#allocation4 + $0x50] sm:$0xff]  ;;  %v2014_v1 = vpack.c.bf16 %v1181_v24, %v1178_v6 }
 0x39c   : > { %1135 = vst [vmem:[#allocation4 + $0x60] sm:$0xf] %v1130_v19  ;;  %1136 = vst [vmem:[#allocation4 + $0x68] sm:$0xf] %v1131_v32  ;;  %v1992_v23 = vpack.c.bf16 %v1168_v22, %v1165_v21  ;;  %v1108_v25 = vpop.permute.xlu0 %1107 }
 0x39d   : > { %2012 = vmatpush3.bf16.msra.mxu1 %v2011_v20  ;;  %v1167_v27 = vld [vmem:[#allocation4 + $0x48] sm:$0xff] }
 0x39e   : > { %1993 = vmatprep.subr.bf16.mxu0 %v1992_v23  ;;  %v1110_v45 = vpop.permute.xlu1 %1109  ;;  %2013 = vmatprep.subr.bf16.mxu1 %v2097_v3  ;;  %v1994_v28 = vpack.c.bf16 %v1167_v27, %v1164_v26  ;;  %v2113_v26 = vmov 90   ;;  %v2088_v27 = vld [vmem:[%s2634_s4 + $0x4] sm:$0xf] }
 0x39f   : > { %v1112_v31 = vsel %vm569_vm11, %v1108_v25, %v1110_v45  ;;  %1118 = vst.msk [vmem:[#allocation4 + $0xd0] sm:$0xf] %vm832_vm14, %v1110_v45  ;;  %2073 = vset.pattern.permute.xlu1 %v2113_v26  ;;  %2074 = vset.pattern.permute.xlu0 %v2113_v26 }
 0x3a0   : > { %1117 = vst [vmem:[#allocation4 + $0xc8] sm:$0xf] %v1112_v31  ;;  %v1147_v29 = vpop.permute.xlu0 %1146  ;;  %1995 = vmatpush1.bf16.msra.mxu0 %v1994_v28 }
 0x3a1   : > { %2015 = vmatpush3.bf16.msra.mxu1 %v2014_v1  ;;  %v1179_v47 = vld [vmem:[#allocation4 + $0xa8] sm:$0xff] }
 0x3a2   : > { %v1149_v30 = vpop.permute.xlu1 %1148  ;;  %1906 = vmatprep.subr.mxu1 %v2099_v8  ;;  %v2002_v52 = vpack.c.bf16 %v1179_v47, %v1176_v51 }
 0x3a3   : > { %v1151_v36 = vsel %vm590_vm12, %v1147_v29, %v1149_v30  ;;  %1157 = vst.msk [vmem:[#allocation4 + $0xd0] sm:$0xf0] %vm844_vm8, %v1149_v30  ;;  %v1171_v38 = vld [vmem:[#allocation4 + $0x68] sm:$0xff]  ;;  %v1170_v39 = vld [vmem:[#allocation4 + $0x60] sm:$0xff]  ;;  %vm1202_vm8 = vcmask 457728  }
 0x3a4   : > { %1156 = vst [vmem:[#allocation4 + $0xc8] sm:$0xf0] %v1151_v36  ;;  %v1996_v41 = vpack.c.bf16 %v1174_v33, %v1171_v38  ;;  %v1998_v42 = vpack.c.bf16 %v1173_v34, %v1170_v39  ;;  %v1106_v43 = vpop.permute.xlu0 %1105 }
 0x3a5   : > { %v1111_v48 = vsel %vm569_vm11, %v1106_v43, %v1108_v25 }
 0x3a6   : > { %1997 = vmatprep.subr.bf16.mxu0 %v1996_v41  ;;  %v1145_v44 = vpop.permute.xlu1 %1144  ;;  %1116 = vst [vmem:[#allocation4 + $0xc0] sm:$0xf] %v1111_v48 }
 0x3a7   : > { %v1150_v49 = vsel %vm590_vm12, %v1145_v44, %v1147_v29  ;;  %1999 = vmatpush1.bf16.msra.mxu0 %v1998_v42 }
 0x3a8   : > { %1155 = vst [vmem:[#allocation4 + $0xc0] sm:$0xf0] %v1150_v49  ;;  %2001 = vmatprep.subr.bf16.mxu0 %v2000_v46  ;;  %v1199_v54 = vpop.permute.xlu0 %1198 }
 0x3aa   : > { %v1184_v53 = vld [vmem:[#allocation4 + $0xd0] sm:$0xff]  ;;  %v1201_v55 = vpop.permute.xlu1 %1200 }
 0x3ab   : > { %2003 = vmatpush1.bf16.msra.mxu0 %v2002_v52  ;;  %1907 = vmatpush3.msra.mxu1 %v1184_v53  ;;  %v1183_v56 = vld [vmem:[#allocation4 + $0xc8] sm:$0xff]  ;;  %v1203_v57 = vsel %vm1202_vm8, %v1199_v54, %v1201_v55 }
 0x3ac   : > { %1225 = vmatprep.subr.mxu0 %v1183_v56  ;;  %1909 = vmatmul.mubr.msk.f32.vlgmr.msra.gmra.mrb[4].mxu1 %vm641_vm13, %v1203_v57 }
 0x3ad   : > { %2032 = vmatprep.subr.bf16.mxu1 %v2097_v3  ;;  %1929 = vmatprep.mubr.msk.f32.mxu1 %vm2639_vm2, %v2099_v8 }
 0x3af   : > { %v1182_v58 = vld [vmem:[#allocation4 + $0xc0] sm:$0xff] }
 0x3b0   : > { %1226 = vmatpush1.msra.mxu0 %v1182_v58 }
 0x3b1   : > { %1805 = vmatmul.mubr.msk.f32.vlgmr.msra.gmra.mrb[4].mxu0 %vm641_vm13, %v1203_v57 }
 0x3b2   : > { %1640 = vmatprep.mubr.f32.mxu0 %v2099_v8 }
 0x3b9   : > { %v1187_v60 = vpop.permute.xlu0 %1186 }
 0x3ba   : > { %v1195_v61 = vrot.slane %v1187_v60, %v2379_v59 }
 0x3bc   : > { %v1205_v0 = vcombine.high %v1195_v61, %v1195_v61 }
 0x47f   : > { %v1346_v62 = vpop.f32.mrb[4].mxu1 }
 0x480   : > { %v1910_v63 = vpop.f32.mrb[5].mxu1  ;;  %v1347_v12 = vadd.f32 %v1346_v62, %v1195_v61 }
 0x482   : > { %v1352_v17 = vmax.f32 %v1347_v12, 0.0 }
 0x484   : > { %v1275_v2 = vpop.f32.mrb[4].mxu0  ;;  %v1355_v50 = vmul.f32 %v1352_v17, %v2397_v16 }
 0x485   : > { %v1276_v4 = vadd.f32 %v1275_v2, %v1195_v61  ;;  %v1277_v5 = vpop.f32.mrb[5].mxu0 }
 0x486   : > { %v1278_v9 = vadd.f32 %v1277_v5, %v1205_v0 }
 0x487   : > { %v1350_v10 = vmax.f32 %v1276_v4, 0.0 }
 0x488   : > { %v1351_v13 = vmax.f32 %v1278_v9, 0.0 }
 0x489   : > { %v1353_v14 = vmul.f32 %v1350_v10, %v2392_v7 }
 0x48a   : > { %v1354_v15 = vmul.f32 %v1351_v13, %v2394_v11 }
 0x48c   : > { %v1359_v18 = vcombine.low %v1353_v14, %v1354_v15 }
 0x48e   : > { %1360 = vrot.lane.b32.xlu1 %v1359_v18, %s2110_s22 }
 0x492   : > { %1362 = vrot.lane.b32.xlu1 %v1355_v50, %s2110_s22 }
 0x500   : > { %v1361_v19 = vpop.permute.xlu1 %1360 }
 0x501   : > { %v1364_v32 = vrot.slane %v1361_v19, 4 }
 0x503   : > { %v1365_v20 = vsel %vm814_vm15, %v1364_v32, %v1361_v19 }
 0x504   : > { %1369 = vst.msk [vmem:[#allocation3] sm:$0xff] %vm2425_vm1, %v1365_v20  ;;  %v1363_v21 = vpop.permute.xlu1 %1362 }
 0x505   : > { %v1366_v7 = vsel %vm814_vm15, %v1364_v32, %v1363_v21 }
 0x506   : > { %1370 = vst.msk [vmem:[#allocation3 + $0x8] sm:$0xf] %vm823_vm0, %v1366_v7 }
 0x50b   : > { %v1379_v11 = vld [vmem:[#allocation3] sm:$0xff] }
 0x50c   : > { %1384 = vrot.lane.b32.xlu0 %v1379_v11, %s2100_s30  ;;  %v1383_v22 = vcombine.high %v1379_v11, %v1379_v11  ;;  %1376 = vst [vmem:[#allocation4] sm:$0xf] %v1379_v11 }
 0x50d   : > { %v1380_v16 = vld [vmem:[#allocation3 + $0x8] sm:$0xf] }
 0x50e   : > { %1388 = vrot.lane.b32.xlu1 %v1380_v16, %s2100_s30  ;;  %1377 = vst [vmem:[#allocation4 + $0x8] sm:$0xf] %v1383_v22  ;;  %v1399_v23 = vld [vmem:[#allocation3 + $0x8] sm:$0xf] }
 0x50f   : > { %v1372_v6 = vld [vmem:[#allocation3 + $0x8] sm:$0xf] }
 0x510   : > { %1407 = vrot.lane.b32.xlu0 %v1399_v23, %s2101_s6  ;;  %1378 = vst.msk [vmem:[#allocation4 + $0x10] sm:$0xf] %vm832_vm14, %v1372_v6  ;;  %v1418_v37 = vld [vmem:[#allocation3 + $0x8] sm:$0xf] }
 0x511   : > { %v1437_v24 = vld [vmem:[#allocation3 + $0x8] sm:$0xf] }
 0x512   : > { %1403 = vrot.lane.b32.xlu1 %v1379_v11, %s2101_s6  ;;  %v1456_v25 = vld [vmem:[#allocation3 + $0x8] sm:$0xf] }
 0x513   : > { %v1475_v45 = vld [vmem:[#allocation3 + $0x8] sm:$0xf]  ;;  %v1531_v13 = vld [vmem:[#allocation4] sm:$0xff] }
 0x514   : > { %1426 = vrot.lane.b32.xlu0 %v1418_v37, %s2104_s10  ;;  %v1494_v31 = vld [vmem:[#allocation3 + $0x8] sm:$0xf] }
 0x515   : > { %v1513_v1 = vld [vmem:[#allocation3 + $0x8] sm:$0xf]  ;;  %v1532_v12 = vld [vmem:[#allocation4 + $0x8] sm:$0xff] }
 0x516   : > { %1441 = vrot.lane.b32.xlu1 %v1379_v11, %s2102_s7 }
 0x517   : > { %v1533_v36 = vld [vmem:[#allocation4 + $0x10] sm:$0xff] }
 0x518   : > { %1422 = vrot.lane.b32.xlu0 %v1379_v11, %s2104_s10 }
 0x51a   : > { %1479 = vrot.lane.b32.xlu1 %v1379_v11, %s2103_s9 }
 0x51c   : > { %1445 = vrot.lane.b32.xlu0 %v1437_v24, %s2102_s7 }
 0x51e   : > { %1405 = vrot.lane.b32.xlu1 %v1383_v22, %s2101_s6  ;;  %s241_s6 = scalar_lea.vmem %s2635_s5, %s2044_s8 }
 0x520   : > { %1464 = vrot.lane.b32.xlu0 %v1456_v25, %s2105_s11 }
 0x522   : > { %1424 = vrot.lane.b32.xlu1 %v1383_v22, %s2104_s10 }
 0x524   : > { %1386 = vrot.lane.b32.xlu0 %v1383_v22, %s2100_s30 }
 0x526   : > { %1443 = vrot.lane.b32.xlu1 %v1383_v22, %s2102_s7 }
 0x528   : > { %1460 = vrot.lane.b32.xlu0 %v1379_v11, %s2105_s11 }
 0x52a   : > { %1462 = vrot.lane.b32.xlu1 %v1383_v22, %s2105_s11 }
 0x52c   : > { %1483 = vrot.lane.b32.xlu0 %v1475_v45, %s2103_s9 }
 0x52e   : > { %1481 = vrot.lane.b32.xlu1 %v1383_v22, %s2103_s9 }
 0x530   : > { %1502 = vrot.lane.b32.xlu0 %v1494_v31, %s2106_s12 }
 0x532   : > { %1500 = vrot.lane.b32.xlu1 %v1383_v22, %s2106_s12 }
 0x534   : > { %1498 = vrot.lane.b32.xlu0 %v1379_v11, %s2106_s12 }
 0x536   : > { %1519 = vrot.lane.b32.xlu1 %v1383_v22, %s2107_s13 }
 0x538   : > { %1521 = vrot.lane.b32.xlu0 %v1513_v1, %s2107_s13 }
 0x53a   : > { %1517 = vrot.lane.b32.xlu1 %v1379_v11, %s2107_s13 }
 0x53c   : > { %1569 = vrot.lane.b32.xlu0 %v2088_v27, %s2114_s28 }
 0x53e   : > { %1559 = vperm.xlu1 %2073, %v2088_v27  }
 0x57e   : > { %v1385_v28 = vpop.permute.xlu0 %1384 }
 0x580   : > { %v1389_v29 = vpop.permute.xlu1 %1388 }
 0x581   : > { %1397 = vst.msk [vmem:[#allocation4 + $0x28] sm:$0xf] %vm832_vm14, %v1389_v29 }
 0x582   : > { %v1408_v30 = vpop.permute.xlu0 %1407 }
 0x583   : > { %1416 = vst.msk [vmem:[#allocation4 + $0x40] sm:$0xf] %vm832_vm14, %v1408_v30 }
 0x584   : > { %v1404_v33 = vpop.permute.xlu1 %1403 }
 0x586   : > { %v1427_v34 = vpop.permute.xlu0 %1426 }
 0x587   : > { %1435 = vst.msk [vmem:[#allocation4 + $0x58] sm:$0xf] %vm832_vm14, %v1427_v34 }
 0x588   : > { %v1442_v35 = vpop.permute.xlu1 %1441  ;;  %v1536_v38 = vld [vmem:[#allocation4 + $0x28] sm:$0xff] }
 0x589   : > { %v2033_v39 = vpack.c.bf16 %v1536_v38, %v1533_v36 }
 0x58a   : > { %v1423_v40 = vpop.permute.xlu0 %1422  ;;  %v1539_v43 = vld [vmem:[#allocation4 + $0x40] sm:$0xff] }
 0x58b   : > { %2034 = vmatpush3.bf16.msra.mxu1 %v2033_v39 }
 0x58c   : > { %v1480_v41 = vpop.permute.xlu1 %1479  ;;  %2035 = vmatprep.subr.bf16.mxu1 %v2097_v3 }
 0x58e   : > { %v1446_v42 = vpop.permute.xlu0 %1445  ;;  %v1542_v44 = vld [vmem:[#allocation4 + $0x58] sm:$0xff] }
 0x58f   : > { %1454 = vst.msk [vmem:[#allocation4 + $0x70] sm:$0xf] %vm832_vm14, %v1446_v42  ;;  %v2036_v46 = vpack.c.bf16 %v1542_v44, %v1539_v43 }
 0x590   : > { %v1406_v47 = vpop.permute.xlu1 %1405 }
 0x591   : > { %v1409_v48 = vsel %vm464_vm4, %v1404_v33, %v1406_v47  ;;  %v1410_v49 = vsel %vm464_vm4, %v1406_v47, %v1408_v30  ;;  %2037 = vmatpush3.bf16.msra.mxu1 %v2036_v46 }
 0x592   : > { %1414 = vst [vmem:[#allocation4 + $0x30] sm:$0xf] %v1409_v48  ;;  %1415 = vst [vmem:[#allocation4 + $0x38] sm:$0xf] %v1410_v49  ;;  %v1465_v51 = vpop.permute.xlu0 %1464  ;;  %2038 = vmatprep.subr.bf16.mxu1 %v2097_v3 }
 0x593   : > { %1473 = vst.msk [vmem:[#allocation4 + $0x88] sm:$0xf] %vm832_vm14, %v1465_v51 }
 0x594   : > { %v1425_v52 = vpop.permute.xlu1 %1424 }
 0x595   : > { %v1428_v53 = vsel %vm485_vm5, %v1423_v40, %v1425_v52  ;;  %v1429_v54 = vsel %vm485_vm5, %v1425_v52, %v1427_v34 }
 0x596   : > { %1433 = vst [vmem:[#allocation4 + $0x48] sm:$0xf] %v1428_v53  ;;  %1434 = vst [vmem:[#allocation4 + $0x50] sm:$0xf] %v1429_v54  ;;  %v1387_v55 = vpop.permute.xlu0 %1386  ;;  %v1545_v63 = vld [vmem:[#allocation4 + $0x70] sm:$0xff] }
 0x597   : > { %v1390_v56 = vsel %vm443_vm9, %v1385_v28, %v1387_v55  ;;  %v1391_v57 = vsel %vm443_vm9, %v1387_v55, %v1389_v29 }
 0x598   : > { %1395 = vst [vmem:[#allocation4 + $0x18] sm:$0xf] %v1390_v56  ;;  %1396 = vst [vmem:[#allocation4 + $0x20] sm:$0xf] %v1391_v57  ;;  %v1444_v58 = vpop.permute.xlu1 %1443 }
 0x599   : > { %v1447_v60 = vsel %vm506_vm6, %v1442_v35, %v1444_v58  ;;  %v1448_v61 = vsel %vm506_vm6, %v1444_v58, %v1446_v42  ;;  %v1538_v21 = vld [vmem:[#allocation4 + $0x38] sm:$0xff]  ;;  %v1537_v16 = vld [vmem:[#allocation4 + $0x30] sm:$0xff] }
 0x59a   : > { %1452 = vst [vmem:[#allocation4 + $0x60] sm:$0xf] %v1447_v60  ;;  %1453 = vst [vmem:[#allocation4 + $0x68] sm:$0xf] %v1448_v61  ;;  %v1461_v62 = vpop.permute.xlu0 %1460  ;;  %v1548_v0 = vld [vmem:[#allocation4 + $0x88] sm:$0xff] }
 0x59b   : > { %v2039_v2 = vpack.c.bf16 %v1548_v0, %v1545_v63 }
 0x59c   : > { %v1463_v4 = vpop.permute.xlu1 %1462 }
 0x59d   : > { %v1466_v5 = vsel %vm527_vm7, %v1461_v62, %v1463_v4  ;;  %v1467_v9 = vsel %vm527_vm7, %v1463_v4, %v1465_v51  ;;  %2040 = vmatpush3.bf16.msra.mxu1 %v2039_v2  ;;  %v1541_v17 = vld [vmem:[#allocation4 + $0x50] sm:$0xff]  ;;  %v1540_v22 = vld [vmem:[#allocation4 + $0x48] sm:$0xff] }
 0x59e   : > { %1471 = vst [vmem:[#allocation4 + $0x78] sm:$0xf] %v1466_v5  ;;  %1472 = vst [vmem:[#allocation4 + $0x80] sm:$0xf] %v1467_v9  ;;  %v1484_v10 = vpop.permute.xlu0 %1483  ;;  %2041 = vmatprep.subr.bf16.mxu1 %v2097_v3  ;;  %v2020_v11 = vpack.c.bf16 %v1541_v17, %v1538_v21  ;;  %v2022_v6 = vpack.c.bf16 %v1540_v22, %v1537_v16 }
 0x59f   : > { %1492 = vst.msk [vmem:[#allocation4 + $0xa0] sm:$0xf] %vm832_vm14, %v1484_v10  ;;  %v1535_v14 = vld [vmem:[#allocation4 + $0x20] sm:$0xff]  ;;  %v1534_v15 = vld [vmem:[#allocation4 + $0x18] sm:$0xff] }
 0x5a0   : > { %v1482_v18 = vpop.permute.xlu1 %1481  ;;  %v2016_v50 = vpack.c.bf16 %v1535_v14, %v1532_v12  ;;  %v2018_v19 = vpack.c.bf16 %v1534_v15, %v1531_v13 }
 0x5a1   : > { %v1485_v32 = vsel %vm548_vm10, %v1480_v41, %v1482_v18  ;;  %v1486_v20 = vsel %vm548_vm10, %v1482_v18, %v1484_v10  ;;  %v1544_v37 = vld [vmem:[#allocation4 + $0x68] sm:$0xff]  ;;  %v1543_v27 = vld [vmem:[#allocation4 + $0x60] sm:$0xff] }
 0x5a2   : > { %1490 = vst [vmem:[#allocation4 + $0x90] sm:$0xf] %v1485_v32  ;;  %1491 = vst [vmem:[#allocation4 + $0x98] sm:$0xf] %v1486_v20  ;;  %v1503_v7 = vpop.permute.xlu0 %1502  ;;  %2017 = vmatprep.subr.bf16.mxu0 %v2016_v50 }
 0x5a3   : > { %1511 = vst.msk [vmem:[#allocation4 + $0xb8] sm:$0xf] %vm832_vm14, %v1503_v7  ;;  %2019 = vmatpush1.bf16.msra.mxu0 %v2018_v19 }
 0x5a4   : > { %2021 = vmatprep.subr.bf16.mxu0 %v2020_v11  ;;  %v1501_v3 = vpop.permute.xlu1 %1500 }
 0x5a5   : > { %v1505_v23 = vsel %vm569_vm11, %v1501_v3, %v1503_v7  ;;  %v1547_v24 = vld [vmem:[#allocation4 + $0x80] sm:$0xff]  ;;  %v1546_v31 = vld [vmem:[#allocation4 + $0x78] sm:$0xff] }
 0x5a6   : > { %1510 = vst [vmem:[#allocation4 + $0xb0] sm:$0xf] %v1505_v23  ;;  %v1499_v25 = vpop.permute.xlu0 %1498  ;;  %v2024_v45 = vpack.c.bf16 %v1547_v24, %v1544_v37  ;;  %v2026_v28 = vpack.c.bf16 %v1546_v31, %v1543_v27  ;;  %v1551_v30 = vld [vmem:[#allocation4 + $0xa0] sm:$0xff] }
 0x5a7   : > { %v1504_v1 = vsel %vm569_vm11, %v1499_v25, %v1501_v3  ;;  %2023 = vmatpush1.bf16.msra.mxu0 %v2022_v6 }
 0x5a8   : > { %1509 = vst [vmem:[#allocation4 + $0xa8] sm:$0xf] %v1504_v1  ;;  %2025 = vmatprep.subr.bf16.mxu0 %v2024_v45  ;;  %v1520_v26 = vpop.permute.xlu1 %1519 }
 0x5a9   : > { %v1550_v39 = vld [vmem:[#allocation4 + $0x98] sm:$0xff]  ;;  %v1549_v42 = vld [vmem:[#allocation4 + $0x90] sm:$0xff] }
 0x5aa   : > { %v1522_v29 = vpop.permute.xlu0 %1521  ;;  %v1554_v33 = vld [vmem:[#allocation4 + $0xb8] sm:$0xff] }
 0x5ab   : > { %v1524_v34 = vsel %vm590_vm12, %v1520_v26, %v1522_v29  ;;  %1530 = vst.msk [vmem:[#allocation4 + $0xd0] sm:$0xf] %vm832_vm14, %v1522_v29  ;;  %2027 = vmatpush1.bf16.msra.mxu0 %v2026_v28  ;;  %v2042_v35 = vpack.c.bf16 %v1554_v33, %v1551_v30 }
 0x5ac   : > { %1529 = vst [vmem:[#allocation4 + $0xc8] sm:$0xf] %v1524_v34  ;;  %v1518_v36 = vpop.permute.xlu1 %1517 }
 0x5ad   : > { %v1523_v38 = vsel %vm590_vm12, %v1518_v36, %v1520_v26  ;;  %2043 = vmatpush3.bf16.msra.mxu1 %v2042_v35  ;;  %v1553_v40 = vld [vmem:[#allocation4 + $0xb0] sm:$0xff] }
 0x5ae   : > { %1528 = vst [vmem:[#allocation4 + $0xc0] sm:$0xf] %v1523_v38  ;;  %v2028_v41 = vpack.c.bf16 %v1553_v40, %v1550_v39  ;;  %1927 = vmatprep.subr.mxu1 %v2099_v8  ;;  %v1570_v46 = vpop.permute.xlu0 %1569 }
 0x5af   : > { %v1552_v43 = vld [vmem:[#allocation4 + $0xa8] sm:$0xff] }
 0x5b0   : > { %2029 = vmatprep.subr.bf16.mxu0 %v2028_v41  ;;  %v2030_v44 = vpack.c.bf16 %v1552_v43, %v1549_v42 }
 0x5b2   : > { %2031 = vmatpush1.bf16.msra.mxu0 %v2030_v44  ;;  %v1557_v47 = vld [vmem:[#allocation4 + $0xd0] sm:$0xff] }
 0x5b3   : > { %1928 = vmatpush3.msra.mxu1 %v1557_v47  ;;  %v1556_v48 = vld [vmem:[#allocation4 + $0xc8] sm:$0xff] }
 0x5b4   : > { %1592 = vmatprep.subr.mxu0 %v1556_v48  ;;  %1930 = vmatmul.mubr.msk.f32.vlgmr.msra.gmra.mrb[6].mxu1 %vm641_vm13, %v1570_v46 }
 0x5b5   : > { %v1555_v49 = vld [vmem:[#allocation4 + $0xc0] sm:$0xff] }
 0x5b6   : > { %1593 = vmatpush1.msra.mxu0 %v1555_v49 }
 0x5b7   : > { %1807 = vmatmul.mubr.msk.f32.vlgmr.msra.gmra.mrb[6].mxu0 %vm641_vm13, %v1570_v46 }
 0x5bd   : > { %v1560_v51 = vpop.permute.xlu1 %1559 }
 0x5be   : > { %v1568_v8 = vrot.slane %v1560_v51, %v2379_v59 }
 0x5c0   : > { %v1572_v55 = vcombine.high %v1568_v8, %v1568_v8 }
 0x687   : > { %v1713_v52 = vpop.f32.mrb[6].mxu1 }
 0x688   : > { %v1714_v53 = vadd.f32 %v1713_v52, %v1568_v8  ;;  %v1931_v54 = vpop.f32.mrb[7].mxu1 }
 0x68a   : > { %v1719_v56 = vmax.f32 %v1714_v53, 0.0  ;;  %v1642_v57 = vpop.f32.mrb[6].mxu0 }
 0x68b   : > { %v1643_v58 = vadd.f32 %v1642_v57, %v1568_v8  ;;  %v1644_v60 = vpop.f32.mrb[7].mxu0 }
 0x68c   : > { %1725 = vst.msk [vmem:[%s241_s6 + $0x8] sm:$0xf] %vm832_vm14, %v1719_v56  ;;  %v1645_v61 = vadd.f32 %v1644_v60, %v1572_v55 }
 0x68d   : > { %v1717_v62 = vmax.f32 %v1643_v58, 0.0 }
 0x68e   : > { %v1718_v63 = vmax.f32 %v1645_v61, 0.0 }
 0x690   : > { %v1722_v0 = vcombine.low %v1717_v62, %v1718_v63 }
 0x692   : > { %1724 = vst [vmem:[%s241_s6] sm:$0xff] %v1722_v0 }
 0x693 PF: > { %s15_s18 = sadd.s32 1, %s2095_s18  }
 0x694   : > { %p12_p4 = scmp.ge.s32.totalorder %s15_s18, 4  }
 0x696   :  { %14 = sbr.rel (!%p12_p4) target bundleno = 1 (0x1), region = 73 }

</bundles_post_ra>
